<compile_context>
chip_gen: v7x
topology: tpu7x:2x2x1
jax: 0.10.0
libtpu: 0.0.40
codegen_flags: <defaults>
</compile_context>

<pallas_src>
import functools

import jax
import jax.numpy as jnp
from jax.experimental import pallas as pl
from jax.experimental.pallas import tpu as pltpu

DP = 128        # feature dims zero-padded to this lane width
NODE_ALIGN = 128  # node dim padded to a multiple of this (lane-dense A/pool)
GRAPH_ALIGN = 8   # graph dim padded to a multiple of this (sublane-aligned)


def _round_up(n, m):
    return ((n + m - 1) // m) * m


# ----------------------------------------------------------------------------
# Fused forward kernel
# ----------------------------------------------------------------------------
def _chemgnn_fused_kernel(lpre, lpost, dp,
                          x_ref, a_ref, invdeg_ref, em_ref,
                          pre_w_ref, pre_s_ref, pre_b_ref,
                          conv_w_ref, conv_s_ref, conv_b_ref,
                          pool_ref, post_w_ref, post_s_ref, post_b_ref,
                          outw_ref, outb_ref,
                          o_ref, hm_ref):
    """One grid step == one conv layer.  hm_ref (VMEM bf16 scratch) holds
    [h | edge_mean]; its h half is the carried node state."""
    l = pl.program_id(0)

    # ---- stage 1 (step 0 only): pre_fc chain, then seed hm = [h | em] ------
    @pl.when(l == 0)
    def _():
        h = x_ref[...]                                   # bf16
        for i in range(lpre):                            # small static unroll
            y = jnp.dot(h, pre_w_ref[i], preferred_element_type=jnp.float32)
            y = y * pre_s_ref[i] + pre_b_ref[i]          # folded BN(eval)+bias
            h = jnp.maximum(y, 0.0).astype(jnp.bfloat16)
        hm_ref[:, :dp] = h
        hm_ref[:, dp:] = em_ref[...]

    # ---- stage 2 (every step): conv layer + BN(eval) + ReLU ----------------
    # Merged MXU pass:  [h | em] @ [[W_self, W_nbr], [W_edge, 0]]
    #   left  half = h @ W_self + em @ W_edge
    #   right half = h @ W_nbr   (neighbor message)
    t = jnp.dot(hm_ref[...], conv_w_ref[l],
                preferred_element_type=jnp.float32)      # [N, 2*dp] f32
    self_plus_edge = t[:, :dp]
    nbr_msg = t[:, dp:]
    nbr = jnp.dot(a_ref[...], nbr_msg.astype(jnp.bfloat16),
                  preferred_element_type=jnp.float32)    # 0/1 A on MXU
    nbr = nbr * invdeg_ref[...]                          # f32 mean norm on VPU
    y = (self_plus_edge + nbr) * conv_s_ref[l] + conv_b_ref[l]
    hm_ref[:, :dp] = jnp.maximum(y, 0.0).astype(jnp.bfloat16)  # dropout==id

    # ---- stage 3 (last step): global_mean_pool -> post_fc -> out_lin -------
    @pl.when(l == pl.num_programs(0) - 1)
    def _():
        g = jnp.dot(pool_ref[...], hm_ref[:, :dp],
                    preferred_element_type=jnp.float32)
        for i in range(lpost):
            y2 = jnp.dot(g.astype(jnp.bfloat16), post_w_ref[i],
                         preferred_element_type=jnp.float32)
            y2 = y2 * post_s_ref[i] + post_b_ref[i]
            g = jnp.maximum(y2, 0.0)
        y2 = jnp.dot(g.astype(jnp.bfloat16), outw_ref[...],
                     preferred_element_type=jnp.float32) + outb_ref[...]
        o_ref[...] = y2.astype(o_ref.dtype)


def chemgnn_pallas_forward(x_p, a_p, invdeg_p, em_p,
                           pre_w, pre_s, pre_b,
                           conv_w, conv_s, conv_b,
                           pool_p, post_w, post_s, post_b,
                           out_w, out_b):
    num_layers = conv_w.shape[0]
    npad, dp = x_p.shape
    gpad = pool_p.shape[0]
    lpre = pre_w.shape[0]
    lpost = post_w.shape[0]
    kernel = functools.partial(_chemgnn_fused_kernel, lpre, lpost, dp)

    def _resident(shape):
        # constant block index across all layer steps -> single-buffered
        n = len(shape)
        return pl.BlockSpec(shape, lambda l: (0,) * n,
                            pipeline_mode=pl.Buffered(1))

    return pl.pallas_call(
        kernel,
        out_shape=jax.ShapeDtypeStruct((gpad, dp), jnp.float32),
        grid=(num_layers,),
        in_specs=[
            _resident((npad, dp)),                   # x
            _resident((npad, npad)),                 # A (0/1, bf16)
            _resident((npad, dp)),                   # 1/deg broadcast (f32)
            _resident((npad, dp)),                   # edge means
            _resident((lpre, dp, dp)),               # pre_fc W stack
            _resident((lpre, 1, dp)),                # pre_fc scale
            _resident((lpre, 1, dp)),                # pre_fc shift
            _resident((num_layers, 2 * dp, 2 * dp)),  # conv W stack (resident)
            _resident((num_layers, 1, dp)),          # conv scale
            _resident((num_layers, 1, dp)),          # conv shift
            _resident((gpad, npad)),                 # mean-pool matrix
            _resident((lpost, dp, dp)),              # post_fc W stack
            _resident((lpost, 1, dp)),               # post_fc scale
            _resident((lpost, 1, dp)),               # post_fc shift
            _resident((dp, dp)),                     # out_lin W
            _resident((1, dp)),                      # out_lin b
        ],
        out_specs=pl.BlockSpec((gpad, dp), lambda l: (0, 0)),
        scratch_shapes=[pltpu.VMEM((npad, 2 * dp), jnp.bfloat16)],  # [h | em]
        compiler_params=pltpu.CompilerParams(
            dimension_semantics=("arbitrary",),      # layer axis is carried
            vmem_limit_bytes=48 * 1024 * 1024),
    )(x_p, a_p, invdeg_p, em_p, pre_w, pre_s, pre_b,
      conv_w, conv_s, conv_b, pool_p, post_w, post_s, post_b, out_w, out_b)


# ----------------------------------------------------------------------------
# BN folding + padding / stacking glue (plain JAX, runs once)
# ----------------------------------------------------------------------------
def _pad2(a, rows, cols):
    return jnp.pad(a, ((0, rows - a.shape[0]), (0, cols - a.shape[1])))


def _pad1(a, n):
    return jnp.pad(a, (0, n - a.shape[0]))


def _bn_fold(bn, bias=None, eps=1e-5):
    scale = bn["gamma"] / jnp.sqrt(bn["var"] + eps)
    shift = bn["beta"] - bn["mean"] * scale
    if bias is not None:
        shift = shift + bias * scale
    return scale, shift


def _stack_fc(lins, bns, dp):
    ws, ss, bs = [], [], []
    for lin, bn in zip(lins, bns):
        scale, shift = _bn_fold(bn, bias=lin["b"])
        ws.append(_pad2(lin["W"], dp, dp))
        ss.append(_pad1(scale, dp))
        bs.append(_pad1(shift, dp))
    w = jnp.stack(ws).astype(jnp.bfloat16)
    s = jnp.stack(ss).reshape(len(ss), 1, dp).astype(jnp.float32)
    b = jnp.stack(bs).reshape(len(bs), 1, dp).astype(jnp.float32)
    return w, s, b


def _stack_conv(convs, bns, dp):
    ws, ss, bs = [], [], []
    for conv, bn in zip(convs, bns):
        din, dout = conv["W_self"].shape
        de = conv["W_edge"].shape[0]
        w = jnp.zeros((2 * dp, 2 * dp), jnp.float32)
        w = w.at[:din, :dout].set(conv["W_self"])
        w = w.at[:din, dp:dp + dout].set(conv["W_nbr"])
        w = w.at[dp:dp + de, :dout].set(conv["W_edge"])
        ws.append(w)
        scale, shift = _bn_fold(bn, bias=conv["b"])
        ss.append(_pad1(scale, dp))
        bs.append(_pad1(shift, dp))
    w = jnp.stack(ws).astype(jnp.bfloat16)
    s = jnp.stack(ss).reshape(len(ss), 1, dp).astype(jnp.float32)
    b = jnp.stack(bs).reshape(len(bs), 1, dp).astype(jnp.float32)
    return w, s, b


# ----------------------------------------------------------------------------
# Graph glue: 0/1 adjacency + inv-degree, segment-mean edge feats, pool matrix
# ----------------------------------------------------------------------------
def build_adjacency_and_invdeg(edge_index, num_nodes):
    src, dst = edge_index[0], edge_index[1]
    a = jnp.zeros((num_nodes, num_nodes), jnp.float32).at[dst, src].add(1.0)
    deg = jnp.zeros((num_nodes,), jnp.float32).at[dst].add(1.0)
    inv_deg = 1.0 / jnp.maximum(deg, 1.0)
    return a, inv_deg


def build_edge_mean(edge_index, edge_attr, num_nodes):
    # Sparse segment-mean of incoming edge features.
    dst = edge_index[1]
    deg = jnp.zeros((num_nodes,), jnp.float32).at[dst].add(1.0)
    s = jnp.zeros((num_nodes, edge_attr.shape[1]), jnp.float32).at[dst].add(edge_attr)
    return s / jnp.maximum(deg, 1.0)[:, None]


def build_mean_pool(batch, num_graphs):
    one_hot = (batch[None, :] == jnp.arange(num_graphs)[:, None]).astype(jnp.float32)
    counts = jnp.maximum(one_hot.sum(axis=1, keepdims=True), 1.0)
    return one_hot / counts


# ----------------------------------------------------------------------------
# Parameter init (mimics the torch module's structure, eval-mode BN stats)
# ----------------------------------------------------------------------------
def _linear_params(key, din, dout):
    k1, k2 = jax.random.split(key)
    return {"W": 0.1 * jax.random.normal(k1, (din, dout), jnp.float32),
            "b": 0.1 * jax.random.normal(k2, (dout,), jnp.float32)}


def _bn_params(key, dim):
    k1, k2, k3 = jax.random.split(key, 3)
    return {"gamma": 1.0 + 0.1 * jax.random.normal(k1, (dim,), jnp.float32),
            "beta": 0.1 * jax.random.normal(k2, (dim,), jnp.float32),
            "mean": 0.05 * jax.random.normal(k3, (dim,), jnp.float32),
            "var": jnp.ones((dim,), jnp.float32)}


def init_params(key, in_dim, pre_fc_dim, conv_out_dim, post_fc_dim,
                num_layers, edge_dim):
    keys = jax.random.split(key, 64)
    ki = iter(range(64))
    params = {"pre_fc": [], "pre_fc_bns": [], "convs": [], "bns": [],
              "post_fc": [], "post_fc_bns": []}
    last = in_dim
    for d in pre_fc_dim:
        params["pre_fc"].append(_linear_params(keys[next(ki)], last, d))
        params["pre_fc_bns"].append(_bn_params(keys[next(ki)], d))
        last = d
    conv_in = pre_fc_dim[-1] if pre_fc_dim else in_dim
    last = conv_in
    for _ in range(num_layers):
        params["convs"].append({
            "W_self": 0.1 * jax.random.normal(keys[next(ki)], (last, conv_out_dim), jnp.float32),
            "W_nbr": 0.1 * jax.random.normal(keys[next(ki)], (last, conv_out_dim), jnp.float32),
            "W_edge": 0.1 * jax.random.normal(keys[next(ki)], (edge_dim, conv_out_dim), jnp.float32),
            "b": 0.1 * jax.random.normal(keys[next(ki)], (conv_out_dim,), jnp.float32),
        })
        params["bns"].append(_bn_params(keys[next(ki)], conv_out_dim))
        last = conv_out_dim
    last = conv_out_dim
    for d in post_fc_dim:
        params["post_fc"].append(_linear_params(keys[next(ki)], last, d))
        params["post_fc_bns"].append(_bn_params(keys[next(ki)], d))
        last = d
    out_dim = post_fc_dim[-1] if post_fc_dim else conv_out_dim
    params["out_lin"] = _linear_params(keys[next(ki)], out_dim, 1)
    return params


# ----------------------------------------------------------------------------
# ChemGNN forward (eval mode) — one fused Pallas call
# ----------------------------------------------------------------------------
def chemgnn_forward(params, x, edge_index, edge_attr, batch, num_graphs, dp=DP):
    n = x.shape[0]
    npad = _round_up(max(n, NODE_ALIGN), NODE_ALIGN)   # lane-dense A / pool
    gpad = _round_up(max(num_graphs, GRAPH_ALIGN), GRAPH_ALIGN)

    a01, inv_deg = build_adjacency_and_invdeg(edge_index, n)    # [N,N], [N]
    em = build_edge_mean(edge_index, edge_attr, n)              # [N, De]
    pool = build_mean_pool(batch, num_graphs)                   # [G, N]

    x_p = _pad2(x, npad, dp).astype(jnp.bfloat16)
    a_p = _pad2(a01, npad, npad).astype(jnp.bfloat16)            # exact 0/1
    invdeg_p = jnp.broadcast_to(_pad1(inv_deg, npad)[:, None],
                                (npad, dp)).astype(jnp.float32)
    em_p = _pad2(em, npad, dp).astype(jnp.bfloat16)
    pool_p = _pad2(pool, gpad, npad).astype(jnp.bfloat16)

    # TODO(synk): the fused kernel assumes >=1 pre_fc and >=1 post_fc layer
    # (as in the demo config); empty fc chains would need a flag-only path.
    assert params["pre_fc"] and params["post_fc"]

    pre_w, pre_s, pre_b = _stack_fc(params["pre_fc"], params["pre_fc_bns"], dp)
    conv_w, conv_s, conv_b = _stack_conv(params["convs"], params["bns"], dp)
    post_w, post_s, post_b = _stack_fc(params["post_fc"], params["post_fc_bns"], dp)

    out_w = _pad2(params["out_lin"]["W"], dp, dp).astype(jnp.bfloat16)
    out_b = _pad1(params["out_lin"]["b"], dp).reshape(1, dp).astype(jnp.float32)

    out_pad = chemgnn_pallas_forward(x_p, a_p, invdeg_p, em_p,
                                     pre_w, pre_s, pre_b,
                                     conv_w, conv_s, conv_b,
                                     pool_p, post_w, post_s, post_b,
                                     out_w, out_b)
    return out_pad[:num_graphs, :params["out_lin"]["W"].shape[1]]   # [G, 1]


if __name__ == "__main__":
    # small synthetic problem
    N_NODES, IN_DIM, EDGE_DIM, N_EDGES, N_GRAPHS = 32, 8, 4, 64, 2
    PRE_FC_DIM, CONV_OUT_DIM, POST_FC_DIM, NUM_LAYERS = [32], 32, [32], 2

    key = jax.random.PRNGKey(0)
    kx, ke_src, ke_dst, kattr, kparams = jax.random.split(key, 5)

    x = jax.random.normal(kx, (N_NODES, IN_DIM), jnp.float32)
    src = jax.random.randint(ke_src, (N_EDGES,), 0, N_NODES)
    dst = jax.random.randint(ke_dst, (N_EDGES,), 0, N_NODES)
    edge_index = jnp.stack([src, dst], axis=0)                 # [2, E]
    edge_attr = jax.random.normal(kattr, (N_EDGES, EDGE_DIM), jnp.float32)
    batch = jnp.concatenate([jnp.zeros((16,), jnp.int32),
                             jnp.ones((16,), jnp.int32)])      # [N]

    params = init_params(kparams, IN_DIM, PRE_FC_DIM, CONV_OUT_DIM,
                         POST_FC_DIM, NUM_LAYERS, EDGE_DIM)

    out = chemgnn_forward(params, x, edge_index, edge_attr, batch, N_GRAPHS)
    out = jax.block_until_ready(out)
    assert out.shape == (N_GRAPHS, 1), out.shape
    assert bool(jnp.all(jnp.isfinite(out)))
    print("KERNEL_OK")
</pallas_src>

<mosaic_0001>
module attributes {stable_mosaic.version = 11 : i64} {
  func.func @_chemgnn_fused_kernel(%arg0: i32, %arg1: memref<128x128xbf16, #tpu.memory_space<vmem>>, %arg2: memref<128x128xbf16, #tpu.memory_space<vmem>>, %arg3: memref<128x128xf32, #tpu.memory_space<vmem>>, %arg4: memref<128x128xbf16, #tpu.memory_space<vmem>>, %arg5: memref<1x128x128xbf16, #tpu.memory_space<vmem>>, %arg6: memref<1x1x128xf32, #tpu.memory_space<vmem>>, %arg7: memref<1x1x128xf32, #tpu.memory_space<vmem>>, %arg8: memref<2x256x256xbf16, #tpu.memory_space<vmem>>, %arg9: memref<2x1x128xf32, #tpu.memory_space<vmem>>, %arg10: memref<2x1x128xf32, #tpu.memory_space<vmem>>, %arg11: memref<8x128xbf16, #tpu.memory_space<vmem>>, %arg12: memref<1x128x128xbf16, #tpu.memory_space<vmem>>, %arg13: memref<1x1x128xf32, #tpu.memory_space<vmem>>, %arg14: memref<1x1x128xf32, #tpu.memory_space<vmem>>, %arg15: memref<128x128xbf16, #tpu.memory_space<vmem>>, %arg16: memref<1x128xf32, #tpu.memory_space<vmem>>, %arg17: memref<8x128xf32, #tpu.memory_space<vmem>>, %arg18: memref<128x256xbf16, #tpu.memory_space<vmem>>) attributes {dimension_semantics = [#tpu.dimension_semantics<arbitrary>], iteration_bounds = array<i64: 2>, scalar_prefetch = 0 : i64, scratch_operands = 1 : i64, tpu.core_type = #tpu.core_type<tc>, window_params = [{pipeline_mode = #tpu.pipeline_mode<synchronous>, transform_indices = @transform_0, window_bounds = array<i64: 128, 128>}, {pipeline_mode = #tpu.pipeline_mode<synchronous>, transform_indices = @transform_1, window_bounds = array<i64: 128, 128>}, {pipeline_mode = #tpu.pipeline_mode<synchronous>, transform_indices = @transform_2, window_bounds = array<i64: 128, 128>}, {pipeline_mode = #tpu.pipeline_mode<synchronous>, transform_indices = @transform_3, window_bounds = array<i64: 128, 128>}, {pipeline_mode = #tpu.pipeline_mode<synchronous>, transform_indices = @transform_4, window_bounds = array<i64: 1, 128, 128>}, {pipeline_mode = #tpu.pipeline_mode<synchronous>, transform_indices = @transform_5, window_bounds = array<i64: 1, 1, 128>}, {pipeline_mode = #tpu.pipeline_mode<synchronous>, transform_indices = @transform_6, window_bounds = array<i64: 1, 1, 128>}, {pipeline_mode = #tpu.pipeline_mode<synchronous>, transform_indices = @transform_7, window_bounds = array<i64: 2, 256, 256>}, {pipeline_mode = #tpu.pipeline_mode<synchronous>, transform_indices = @transform_8, window_bounds = array<i64: 2, 1, 128>}, {pipeline_mode = #tpu.pipeline_mode<synchronous>, transform_indices = @transform_9, window_bounds = array<i64: 2, 1, 128>}, {pipeline_mode = #tpu.pipeline_mode<synchronous>, transform_indices = @transform_10, window_bounds = array<i64: 8, 128>}, {pipeline_mode = #tpu.pipeline_mode<synchronous>, transform_indices = @transform_11, window_bounds = array<i64: 1, 128, 128>}, {pipeline_mode = #tpu.pipeline_mode<synchronous>, transform_indices = @transform_12, window_bounds = array<i64: 1, 1, 128>}, {pipeline_mode = #tpu.pipeline_mode<synchronous>, transform_indices = @transform_13, window_bounds = array<i64: 1, 1, 128>}, {pipeline_mode = #tpu.pipeline_mode<synchronous>, transform_indices = @transform_14, window_bounds = array<i64: 128, 128>}, {pipeline_mode = #tpu.pipeline_mode<synchronous>, transform_indices = @transform_15, window_bounds = array<i64: 1, 128>}, {pipeline_mode = #tpu.pipeline_mode<synchronous>, transform_indices = @transform_16, window_bounds = array<i64: 8, 128>}]} {
    %c0_i32 = arith.constant 0 : i32
    %0 = arith.cmpi eq, %arg0, %c0_i32 : i32
    %1 = arith.extui %0 : i1 to i32
    %c0_i32_0 = arith.constant 0 : i32
    %2 = arith.cmpi ne, %1, %c0_i32_0 : i32
    scf.if %2 {
      %c0_17 = arith.constant 0 : index
      %c0_18 = arith.constant 0 : index
      %33 = vector.load %arg1[%c0_17, %c0_18] : memref<128x128xbf16, #tpu.memory_space<vmem>>, vector<128x128xbf16>
      %c0_19 = arith.constant 0 : index
      %c0_20 = arith.constant 0 : index
      %c0_21 = arith.constant 0 : index
      %34 = vector.load %arg5[%c0_19, %c0_20, %c0_21] : memref<1x128x128xbf16, #tpu.memory_space<vmem>>, vector<1x128x128xbf16>
      %35 = vector.shape_cast %34 : vector<1x128x128xbf16> to vector<128x128xbf16>
      %cst_22 = arith.constant dense<0.000000e+00> : vector<128x128xf32>
      %36 = tpu.matmul %33, %35, %cst_22 {dimension_numbers = #tpu.dot_dimension_numbers<[1], [0], [0], [1], [0, 0, 1, 1], [], []>} : vector<128x128xbf16>, vector<128x128xbf16>, vector<128x128xf32> -> vector<128x128xf32>
      %c0_23 = arith.constant 0 : index
      %c0_24 = arith.constant 0 : index
      %c0_25 = arith.constant 0 : index
      %37 = vector.load %arg6[%c0_23, %c0_24, %c0_25] : memref<1x1x128xf32, #tpu.memory_space<vmem>>, vector<1x1x128xf32>
      %38 = vector.shape_cast %37 : vector<1x1x128xf32> to vector<1x128xf32>
      %39 = vector.broadcast %38 : vector<1x128xf32> to vector<128x128xf32>
      %40 = arith.mulf %36, %39 : vector<128x128xf32>
      %c0_26 = arith.constant 0 : index
      %c0_27 = arith.constant 0 : index
      %c0_28 = arith.constant 0 : index
      %41 = vector.load %arg7[%c0_26, %c0_27, %c0_28] : memref<1x1x128xf32, #tpu.memory_space<vmem>>, vector<1x1x128xf32>
      %42 = vector.shape_cast %41 : vector<1x1x128xf32> to vector<1x128xf32>
      %43 = vector.broadcast %42 : vector<1x128xf32> to vector<128x128xf32>
      %44 = arith.addf %40, %43 : vector<128x128xf32>
      %cst_29 = arith.constant 0.000000e+00 : f32
      %45 = vector.broadcast %cst_29 : f32 to vector<128x128xf32>
      %46 = arith.maximumf %44, %45 : vector<128x128xf32>
      %47 = arith.truncf %46 : vector<128x128xf32> to vector<128x128xbf16>
      %c0_30 = arith.constant 0 : index
      %c0_31 = arith.constant 0 : index
      %48 = vector.load %arg18[%c0_30, %c0_31] : memref<128x256xbf16, #tpu.memory_space<vmem>>, vector<128x128xbf16>
      tpu.vector_store %arg18[%c0_30, %c0_31], %47 {strides = array<i32>} : memref<128x256xbf16, #tpu.memory_space<vmem>>, vector<128x128xbf16>,
      %c0_32 = arith.constant 0 : index
      %c0_33 = arith.constant 0 : index
      %49 = vector.load %arg4[%c0_32, %c0_33] : memref<128x128xbf16, #tpu.memory_space<vmem>>, vector<128x128xbf16>
      %c0_34 = arith.constant 0 : index
      %c128 = arith.constant 128 : index
      %50 = vector.load %arg18[%c0_34, %c128] : memref<128x256xbf16, #tpu.memory_space<vmem>>, vector<128x128xbf16>
      tpu.vector_store %arg18[%c0_34, %c128], %49 {strides = array<i32>} : memref<128x256xbf16, #tpu.memory_space<vmem>>, vector<128x128xbf16>,
    } else {
    }
    %c0 = arith.constant 0 : index
    %c0_1 = arith.constant 0 : index
    %3 = vector.load %arg18[%c0, %c0_1] : memref<128x256xbf16, #tpu.memory_space<vmem>>, vector<128x256xbf16>
    %4 = arith.index_cast %arg0 : i32 to index
    %c0_2 = arith.constant 0 : index
    %c0_3 = arith.constant 0 : index
    %5 = vector.load %arg8[%4, %c0_2, %c0_3] : memref<2x256x256xbf16, #tpu.memory_space<vmem>>, vector<1x256x256xbf16>
    %6 = vector.shape_cast %5 : vector<1x256x256xbf16> to vector<256x256xbf16>
    %cst = arith.constant dense<0.000000e+00> : vector<128x256xf32>
    %7 = tpu.matmul %3, %6, %cst {dimension_numbers = #tpu.dot_dimension_numbers<[1], [0], [0], [1], [0, 0, 1, 1], [], []>} : vector<128x256xbf16>, vector<256x256xbf16>, vector<128x256xf32> -> vector<128x256xf32>
    %8 = vector.extract_strided_slice %7 {offsets = [0, 0], sizes = [128, 128], strides = [1, 1]} : vector<128x256xf32> to vector<128x128xf32>
    %9 = vector.extract_strided_slice %7 {offsets = [0, 128], sizes = [128, 128], strides = [1, 1]} : vector<128x256xf32> to vector<128x128xf32>
    %c0_4 = arith.constant 0 : index
    %c0_5 = arith.constant 0 : index
    %10 = vector.load %arg2[%c0_4, %c0_5] : memref<128x128xbf16, #tpu.memory_space<vmem>>, vector<128x128xbf16>
    %11 = arith.truncf %9 : vector<128x128xf32> to vector<128x128xbf16>
    %cst_6 = arith.constant dense<0.000000e+00> : vector<128x128xf32>
    %12 = tpu.matmul %10, %11, %cst_6 {dimension_numbers = #tpu.dot_dimension_numbers<[1], [0], [0], [1], [0, 0, 1, 1], [], []>} : vector<128x128xbf16>, vector<128x128xbf16>, vector<128x128xf32> -> vector<128x128xf32>
    %c0_7 = arith.constant 0 : index
    %c0_8 = arith.constant 0 : index
    %13 = vector.load %arg3[%c0_7, %c0_8] : memref<128x128xf32, #tpu.memory_space<vmem>>, vector<128x128xf32>
    %14 = arith.mulf %12, %13 : vector<128x128xf32>
    %15 = arith.addf %8, %14 : vector<128x128xf32>
    %16 = arith.index_cast %arg0 : i32 to index
    %c0_9 = arith.constant 0 : index
    %c0_10 = arith.constant 0 : index
    %17 = vector.load %arg9[%16, %c0_9, %c0_10] : memref<2x1x128xf32, #tpu.memory_space<vmem>>, vector<1x1x128xf32>
    %18 = vector.shape_cast %17 : vector<1x1x128xf32> to vector<1x128xf32>
    %19 = vector.broadcast %18 : vector<1x128xf32> to vector<128x128xf32>
    %20 = arith.mulf %15, %19 : vector<128x128xf32>
    %21 = arith.index_cast %arg0 : i32 to index
    %c0_11 = arith.constant 0 : index
    %c0_12 = arith.constant 0 : index
    %22 = vector.load %arg10[%21, %c0_11, %c0_12] : memref<2x1x128xf32, #tpu.memory_space<vmem>>, vector<1x1x128xf32>
    %23 = vector.shape_cast %22 : vector<1x1x128xf32> to vector<1x128xf32>
    %24 = vector.broadcast %23 : vector<1x128xf32> to vector<128x128xf32>
    %25 = arith.addf %20, %24 : vector<128x128xf32>
    %cst_13 = arith.constant 0.000000e+00 : f32
    %26 = vector.broadcast %cst_13 : f32 to vector<128x128xf32>
    %27 = arith.maximumf %25, %26 : vector<128x128xf32>
    %28 = arith.truncf %27 : vector<128x128xf32> to vector<128x128xbf16>
    %c0_14 = arith.constant 0 : index
    %c0_15 = arith.constant 0 : index
    %29 = vector.load %arg18[%c0_14, %c0_15] : memref<128x256xbf16, #tpu.memory_space<vmem>>, vector<128x128xbf16>
    tpu.vector_store %arg18[%c0_14, %c0_15], %28 {strides = array<i32>} : memref<128x256xbf16, #tpu.memory_space<vmem>>, vector<128x128xbf16>,
    %c1_i32 = arith.constant 1 : i32
    %30 = arith.cmpi eq, %arg0, %c1_i32 : i32
    %31 = arith.extui %30 : i1 to i32
    %c0_i32_16 = arith.constant 0 : i32
    %32 = arith.cmpi ne, %31, %c0_i32_16 : i32
    scf.if %32 {
      %c0_17 = arith.constant 0 : index
      %c0_18 = arith.constant 0 : index
      %33 = vector.load %arg11[%c0_17, %c0_18] : memref<8x128xbf16, #tpu.memory_space<vmem>>, vector<8x128xbf16>
      %c0_19 = arith.constant 0 : index
      %c0_20 = arith.constant 0 : index
      %34 = vector.load %arg18[%c0_19, %c0_20] : memref<128x256xbf16, #tpu.memory_space<vmem>>, vector<128x128xbf16>
      %cst_21 = arith.constant dense<0.000000e+00> : vector<8x128xf32>
      %35 = tpu.matmul %33, %34, %cst_21 {dimension_numbers = #tpu.dot_dimension_numbers<[1], [0], [0], [1], [0, 0, 1, 1], [], []>} : vector<8x128xbf16>, vector<128x128xbf16>, vector<8x128xf32> -> vector<8x128xf32>
      %36 = arith.truncf %35 : vector<8x128xf32> to vector<8x128xbf16>
      %c0_22 = arith.constant 0 : index
      %c0_23 = arith.constant 0 : index
      %c0_24 = arith.constant 0 : index
      %37 = vector.load %arg12[%c0_22, %c0_23, %c0_24] : memref<1x128x128xbf16, #tpu.memory_space<vmem>>, vector<1x128x128xbf16>
      %38 = vector.shape_cast %37 : vector<1x128x128xbf16> to vector<128x128xbf16>
      %cst_25 = arith.constant dense<0.000000e+00> : vector<8x128xf32>
      %39 = tpu.matmul %36, %38, %cst_25 {dimension_numbers = #tpu.dot_dimension_numbers<[1], [0], [0], [1], [0, 0, 1, 1], [], []>} : vector<8x128xbf16>, vector<128x128xbf16>, vector<8x128xf32> -> vector<8x128xf32>
      %c0_26 = arith.constant 0 : index
      %c0_27 = arith.constant 0 : index
      %c0_28 = arith.constant 0 : index
      %40 = vector.load %arg13[%c0_26, %c0_27, %c0_28] : memref<1x1x128xf32, #tpu.memory_space<vmem>>, vector<1x1x128xf32>
      %41 = vector.shape_cast %40 : vector<1x1x128xf32> to vector<1x128xf32>
      %42 = vector.broadcast %41 : vector<1x128xf32> to vector<8x128xf32>
      %43 = arith.mulf %39, %42 : vector<8x128xf32>
      %c0_29 = arith.constant 0 : index
      %c0_30 = arith.constant 0 : index
      %c0_31 = arith.constant 0 : index
      %44 = vector.load %arg14[%c0_29, %c0_30, %c0_31] : memref<1x1x128xf32, #tpu.memory_space<vmem>>, vector<1x1x128xf32>
      %45 = vector.shape_cast %44 : vector<1x1x128xf32> to vector<1x128xf32>
      %46 = vector.broadcast %45 : vector<1x128xf32> to vector<8x128xf32>
      %47 = arith.addf %43, %46 : vector<8x128xf32>
      %cst_32 = arith.constant 0.000000e+00 : f32
      %48 = vector.broadcast %cst_32 : f32 to vector<8x128xf32>
      %49 = arith.maximumf %47, %48 : vector<8x128xf32>
      %50 = arith.truncf %49 : vector<8x128xf32> to vector<8x128xbf16>
      %c0_33 = arith.constant 0 : index
      %c0_34 = arith.constant 0 : index
      %51 = vector.load %arg15[%c0_33, %c0_34] : memref<128x128xbf16, #tpu.memory_space<vmem>>, vector<128x128xbf16>
      %cst_35 = arith.constant dense<0.000000e+00> : vector<8x128xf32>
      %52 = tpu.matmul %50, %51, %cst_35 {dimension_numbers = #tpu.dot_dimension_numbers<[1], [0], [0], [1], [0, 0, 1, 1], [], []>} : vector<8x128xbf16>, vector<128x128xbf16>, vector<8x128xf32> -> vector<8x128xf32>
      %c0_36 = arith.constant 0 : index
      %c0_37 = arith.constant 0 : index
      %53 = vector.load %arg16[%c0_36, %c0_37] : memref<1x128xf32, #tpu.memory_space<vmem>>, vector<1x128xf32>
      %54 = vector.broadcast %53 : vector<1x128xf32> to vector<8x128xf32>
      %55 = arith.addf %52, %54 : vector<8x128xf32>
      %c0_38 = arith.constant 0 : index
      %c0_39 = arith.constant 0 : index
      %56 = vector.load %arg17[%c0_38, %c0_39] : memref<8x128xf32, #tpu.memory_space<vmem>>, vector<8x128xf32>
      tpu.vector_store %arg17[%c0_38, %c0_39], %55 {strides = array<i32>} : memref<8x128xf32, #tpu.memory_space<vmem>>, vector<8x128xf32>,
    } else {
    }
    return
  }
  func.func @transform_0(%arg0: i32) -> (i32, i32) {
    %c0_i32 = arith.constant 0 : i32
    %c0_i32_0 = arith.constant 0 : i32
    %c0_i32_1 = arith.constant 0 : i32
    return %c0_i32, %c0_i32_0 : i32, i32
  }
  func.func @transform_1(%arg0: i32) -> (i32, i32) {
    %c0_i32 = arith.constant 0 : i32
    %c0_i32_0 = arith.constant 0 : i32
    %c0_i32_1 = arith.constant 0 : i32
    return %c0_i32, %c0_i32_0 : i32, i32
  }
  func.func @transform_2(%arg0: i32) -> (i32, i32) {
    %c0_i32 = arith.constant 0 : i32
    %c0_i32_0 = arith.constant 0 : i32
    %c0_i32_1 = arith.constant 0 : i32
    return %c0_i32, %c0_i32_0 : i32, i32
  }
  func.func @transform_3(%arg0: i32) -> (i32, i32) {
    %c0_i32 = arith.constant 0 : i32
    %c0_i32_0 = arith.constant 0 : i32
    %c0_i32_1 = arith.constant 0 : i32
    return %c0_i32, %c0_i32_0 : i32, i32
  }
  func.func @transform_4(%arg0: i32) -> (i32, i32, i32) {
    %c0_i32 = arith.constant 0 : i32
    %c0_i32_0 = arith.constant 0 : i32
    %c0_i32_1 = arith.constant 0 : i32
    %c0_i32_2 = arith.constant 0 : i32
    return %c0_i32, %c0_i32_0, %c0_i32_1 : i32, i32, i32
  }
  func.func @transform_5(%arg0: i32) -> (i32, i32, i32) {
    %c0_i32 = arith.constant 0 : i32
    %c0_i32_0 = arith.constant 0 : i32
    %c0_i32_1 = arith.constant 0 : i32
    %c0_i32_2 = arith.constant 0 : i32
    return %c0_i32, %c0_i32_0, %c0_i32_1 : i32, i32, i32
  }
  func.func @transform_6(%arg0: i32) -> (i32, i32, i32) {
    %c0_i32 = arith.constant 0 : i32
    %c0_i32_0 = arith.constant 0 : i32
    %c0_i32_1 = arith.constant 0 : i32
    %c0_i32_2 = arith.constant 0 : i32
    return %c0_i32, %c0_i32_0, %c0_i32_1 : i32, i32, i32
  }
  func.func @transform_7(%arg0: i32) -> (i32, i32, i32) {
    %c0_i32 = arith.constant 0 : i32
    %c0_i32_0 = arith.constant 0 : i32
    %c0_i32_1 = arith.constant 0 : i32
    %c0_i32_2 = arith.constant 0 : i32
    return %c0_i32, %c0_i32_0, %c0_i32_1 : i32, i32, i32
  }
  func.func @transform_8(%arg0: i32) -> (i32, i32, i32) {
    %c0_i32 = arith.constant 0 : i32
    %c0_i32_0 = arith.constant 0 : i32
    %c0_i32_1 = arith.constant 0 : i32
    %c0_i32_2 = arith.constant 0 : i32
    return %c0_i32, %c0_i32_0, %c0_i32_1 : i32, i32, i32
  }
  func.func @transform_9(%arg0: i32) -> (i32, i32, i32) {
    %c0_i32 = arith.constant 0 : i32
    %c0_i32_0 = arith.constant 0 : i32
    %c0_i32_1 = arith.constant 0 : i32
    %c0_i32_2 = arith.constant 0 : i32
    return %c0_i32, %c0_i32_0, %c0_i32_1 : i32, i32, i32
  }
  func.func @transform_10(%arg0: i32) -> (i32, i32) {
    %c0_i32 = arith.constant 0 : i32
    %c0_i32_0 = arith.constant 0 : i32
    %c0_i32_1 = arith.constant 0 : i32
    return %c0_i32, %c0_i32_0 : i32, i32
  }
  func.func @transform_11(%arg0: i32) -> (i32, i32, i32) {
    %c0_i32 = arith.constant 0 : i32
    %c0_i32_0 = arith.constant 0 : i32
    %c0_i32_1 = arith.constant 0 : i32
    %c0_i32_2 = arith.constant 0 : i32
    return %c0_i32, %c0_i32_0, %c0_i32_1 : i32, i32, i32
  }
  func.func @transform_12(%arg0: i32) -> (i32, i32, i32) {
    %c0_i32 = arith.constant 0 : i32
    %c0_i32_0 = arith.constant 0 : i32
    %c0_i32_1 = arith.constant 0 : i32
    %c0_i32_2 = arith.constant 0 : i32
    return %c0_i32, %c0_i32_0, %c0_i32_1 : i32, i32, i32
  }
  func.func @transform_13(%arg0: i32) -> (i32, i32, i32) {
    %c0_i32 = arith.constant 0 : i32
    %c0_i32_0 = arith.constant 0 : i32
    %c0_i32_1 = arith.constant 0 : i32
    %c0_i32_2 = arith.constant 0 : i32
    return %c0_i32, %c0_i32_0, %c0_i32_1 : i32, i32, i32
  }
  func.func @transform_14(%arg0: i32) -> (i32, i32) {
    %c0_i32 = arith.constant 0 : i32
    %c0_i32_0 = arith.constant 0 : i32
    %c0_i32_1 = arith.constant 0 : i32
    return %c0_i32, %c0_i32_0 : i32, i32
  }
  func.func @transform_15(%arg0: i32) -> (i32, i32) {
    %c0_i32 = arith.constant 0 : i32
    %c0_i32_0 = arith.constant 0 : i32
    %c0_i32_1 = arith.constant 0 : i32
    return %c0_i32, %c0_i32_0 : i32, i32
  }
  func.func @transform_16(%arg0: i32) -> (i32, i32) {
    %c0_i32 = arith.constant 0 : i32
    %c0_i32_0 = arith.constant 0 : i32
    %c0_i32_1 = arith.constant 0 : i32
    return %c0_i32, %c0_i32_0 : i32, i32
  }
}

</mosaic_0001>

<bundles_post_ra>
// kernel: tpu_custom_call.1
= control target key start
LH: loop header
LB: loop body
LE: loop exit
PB: predicated region body
PF: predicated region fallthrough
CT: control target
= control target key end

     0   :  { %s3364_s0 = inlined_call_operand.hbm [shape: bf16[128,128], index: 0, kind: input, shape index: {}]   ;;  %s3365_s1 = inlined_call_operand.hbm [shape: bf16[128,128], index: 1, kind: input, shape index: {}]   ;;  %s3366_s2 = inlined_call_operand.hbm [shape: f32[128,128], index: 2, kind: input, shape index: {}]   ;;  %s3367_s3 = inlined_call_operand.hbm [shape: bf16[128,128], index: 3, kind: input, shape index: {}]   ;;  %s3368_s4 = inlined_call_operand.hbm [shape: bf16[1,128,128], index: 4, kind: input, shape index: {}]   ;;  %s3369_s5 = inlined_call_operand.vmem [shape: f32[1,1,128], index: 5, kind: input, shape index: {}]   ;;  %s3370_s6 = inlined_call_operand.vmem [shape: f32[1,1,128], index: 6, kind: input, shape index: {}]   ;;  %s3371_s7 = inlined_call_operand.hbm [shape: bf16[2,256,256], index: 7, kind: input, shape index: {}]   ;;  %s3372_s8 = inlined_call_operand.vmem [shape: f32[2,1,128], index: 8, kind: input, shape index: {}]   ;;  %s3373_s9 = inlined_call_operand.vmem [shape: f32[2,1,128], index: 9, kind: input, shape index: {}]   ;;  %s3374_s10 = inlined_call_operand.vmem [shape: bf16[8,128], index: 10, kind: input, shape index: {}]   ;;  %s3375_s11 = inlined_call_operand.hbm [shape: bf16[1,128,128], index: 11, kind: input, shape index: {}]   ;;  %s3376_s12 = inlined_call_operand.vmem [shape: f32[1,1,128], index: 12, kind: input, shape index: {}]   ;;  %s3377_s13 = inlined_call_operand.vmem [shape: f32[1,1,128], index: 13, kind: input, shape index: {}]   ;;  %s3378_s14 = inlined_call_operand.hbm [shape: bf16[128,128], index: 14, kind: input, shape index: {}]   ;;  %s3379_s15 = inlined_call_operand.vmem [shape: f32[1,128], index: 15, kind: input, shape index: {}]   ;;  %s3380_s16 = inlined_call_operand.hbm [shape: f32[8,128], index: 16, kind: output, shape index: {}]  }
   0x1   :  { %3390 = sst [smem:[#allocation25_spill]] %s3364_s0 }
   0x2   :  { %3391 = sst [smem:[#allocation26_spill]] %s3365_s1 }
   0x3   :  { %3392 = sst [smem:[#allocation27_spill]] %s3367_s3 }
   0x4   :  { %3393 = sst [smem:[#allocation28_spill]] %s3377_s13 }
   0x5   :  { %3394 = sst [smem:[#allocation29_spill]] %s3379_s15 }
   0x6   :  { %3395 = sst [smem:[#allocation30_spill]] %s3380_s16 }
   0x7   :  { %21 = vsyncpa [#allocation4], 0 }
   0x8   :  { %22 = vsyncpa [#allocation7], 0 }
   0x9   :  { %23 = vsyncpa [#allocation10], 0 }
   0xa   :  { %24 = vsyncpa [#allocation13], 0 }
   0xb   :  { %25 = vsyncpa [#allocation16], 0 }
   0xc   :  { %26 = vsyncpa [#allocation5], 0  ;;  %s2905_s21 = smov 0  }
   0xd LB: > { %3396 = sst [smem:[#allocation24_spill]] %s2803_s21  ;;  %s2911_s22 = sadd.s32 4294967295, %s2803_s21   ;;  %s2803_s21 = sphi %s2905_s21, %s32_s21  }
   0xe   : > { %p2012_p0 = scmp.ge.s32.totalorder %s2803_s21, 1  ;;  %p394_p1 = scmp.lt.s32.totalorder %s2803_s21, 3 }
   0xf   : > { %p3384_p3 = scmp.eq.s32.totalorder %s2911_s22, 0  ;;  %s2805_s24 = smov [#allocation6]  }
  0x10   : > { %p2917_p4 = pnand %p2012_p0, %p394_p1  ;;  %s419_s25 = sshll.u32 %s2805_s24, 4  ;;  %s2921_s25 = int_to_ptr.vmem [resolvable:$true] %s419_s25 }
  0x11   : > { %s2806_s26 = smov [#allocation9]   ;;  %s2807_s29 = smov [#allocation12]  }
  0x12   : > { %s3397_s23 = scalar_select %p2917_p4, 1, 0 }
  0x13   : > { %p2361_p5 = pneg %p2917_p4  ;;  %s445_s27 = sshll.u32 %s2806_s26, 4  ;;  %s2925_s27 = int_to_ptr.vmem [resolvable:$true] %s445_s27 }
  0x14   : > { %s2933_s30 = sshll.u32 %s2807_s29, 4  ;;  %s3399_s1 = sld [smem:[#allocation26_spill]]  ;;  %s478_s30 = int_to_ptr.vmem [resolvable:$true] %s2933_s30 }
  0x15   : > { %p2929_p6 = pnand %p3384_p3, %p2361_p5 }
  0x17   : > { %p2943_p8 = pneg %p2929_p6 }
  0x1a   : > { %s2523_s18 = scalar_lea.hbm %s3399_s1, 1024 }
  0x1b   : > { %p2524_p7 = scmp.ne.s32.totalorder %s3399_s1, %s2523_s18  ;;  %p2530_p11 = scmp.lt.u32.totalorder %s2523_s18, %s3399_s1 }
  0x1d   : > { %p2526_p9 = pnand %p2943_p8, %p2524_p7 }
  0x1f   : > { %p2527_p10 = pneg %p2526_p9 }
  0x21   : > { %p2532_p12 = pnand %p2530_p11, %p2527_p10 }
  0x23   : > { %2535 = shalt.err (!%p2532_p12)
}
  0x24   : > { %s2536_s0 = scalar_lea.vmem %s2921_s25, 1024  ;;  %p2544_p5 = scmp.lt.s32.totalorder %s2921_s25, %s2921_s25 }
  0x25   : > { %p2537_p13 = scmp.ne.s32.totalorder %s2921_s25, %s2536_s0  ;;  %p2545_p2 = scmp.lt.s32.totalorder %s2536_s0, %s2536_s0 }
  0x27   : > { %p2539_p0 = pnand %p2537_p13, %p2943_p8  ;;  %p2546_p7 = por %p2545_p2, %p2544_p5 }
  0x29   : > { %p2540_p1 = pneg %p2539_p0 }
  0x2b   : > { %p2547_p9 = pnand %p2546_p7, %p2540_p1 }
  0x2d   : > { %2550 = shalt.err (!%p2547_p9)
}
  0x2e   : > { %s3386_s17 = smov 64   ;;  %s2809_s18 = smov 4  }
  0x2f   : > { %2367 = dma.hbm_to_vmem [thread:$0]  (!%p2929_p6), %s3399_s1, 1024, %s2921_s25, [#allocation7], %s3386_s17, %s3386_s17, %s2809_s18  }
  0x30   : > { %s3401_s3 = sld [smem:[#allocation27_spill]] }
  0x36   : > { %s2551_s0 = scalar_lea.hbm %s3401_s3, 1024 }
  0x37   : > { %p2552_p2 = scmp.ne.s32.totalorder %s3401_s3, %s2551_s0  ;;  %p2558_p12 = scmp.lt.u32.totalorder %s2551_s0, %s3401_s3 }
  0x39   : > { %p2554_p10 = pnand %p2552_p2, %p2943_p8 }
  0x3b   : > { %p2555_p11 = pneg %p2554_p10 }
  0x3d   : > { %p2560_p13 = pnand %p2558_p12, %p2555_p11 }
  0x3f   : > { %2563 = shalt.err (!%p2560_p13)
}
  0x40   : > { %s2564_s25 = scalar_lea.vmem %s2925_s27, 1024  ;;  %p2572_p7 = scmp.lt.s32.totalorder %s2925_s27, %s2925_s27 }
  0x41   : > { %p2565_p0 = scmp.ne.s32.totalorder %s2925_s27, %s2564_s25  ;;  %p2573_p9 = scmp.lt.s32.totalorder %s2564_s25, %s2564_s25 }
  0x43   : > { %p2567_p1 = pnand %p2565_p0, %p2943_p8  ;;  %p2574_p2 = por %p2573_p9, %p2572_p7 }
  0x45   : > { %p2568_p5 = pneg %p2567_p1 }
  0x47   : > { %p2575_p10 = pnand %p2574_p2, %p2568_p5 }
  0x49   : > { %2578 = shalt.err (!%p2575_p10)
}
  0x4a   : > { %2373 = dma.hbm_to_vmem [thread:$0]  (!%p2929_p6), %s3401_s3, 1024, %s2925_s27, [#allocation10], %s3386_s17, %s3386_s17, %s2809_s18  }
  0x4b   : > { %s2810_s16 = smov [#allocation3]   ;;  %s2579_s26 = scalar_lea.hbm %s3371_s7, 8192 }
  0x4c   : > { %s406_s21 = sshll.u32 %s2810_s16, 4  ;;  %p2580_p11 = scmp.ne.s32.totalorder %s3371_s7, %s2579_s26  ;;  %s407_s21 = int_to_ptr.vmem [resolvable:$true] %s406_s21 }
  0x4d   : > { %p2586_p0 = scmp.lt.u32.totalorder %s2579_s26, %s3371_s7 }
  0x4e   : > { %p2582_p12 = pnand %p2580_p11, %p2943_p8 }
  0x50   : > { %p2583_p13 = pneg %p2582_p12 }
  0x52   : > { %p2588_p1 = pnand %p2586_p0, %p2583_p13 }
  0x54   : > { %2591 = shalt.err (!%p2588_p1)
}
  0x55   : > { %s2592_s27 = scalar_lea.vmem %s478_s30, 8192  ;;  %p2600_p2 = scmp.lt.s32.totalorder %s478_s30, %s478_s30 }
  0x56   : > { %p2593_p5 = scmp.ne.s32.totalorder %s478_s30, %s2592_s27  ;;  %p2601_p10 = scmp.lt.s32.totalorder %s2592_s27, %s2592_s27 }
  0x58   : > { %p2595_p7 = pnand %p2593_p5, %p2943_p8  ;;  %p2602_p3 = por %p2601_p10, %p2600_p2 }
  0x5a   : > { %p2596_p9 = pneg %p2595_p7 }
  0x5c   : > { %p2603_p4 = pnand %p2602_p3, %p2596_p9 }
  0x5e   : > { %2606 = shalt.err (!%p2603_p4)
}
  0x5f   : > { %s3388_s13 = smov 128   ;;  %s3389_s15 = smov 8  }
  0x60   : > { %2379 = dma.hbm_to_vmem [thread:$0]  (!%p2929_p6), %s3371_s7, 8192, %s478_s30, [#allocation13], %s3388_s13, %s3388_s13, %s3389_s15  }
  0x61   : > { %s3402_s26 = sld [smem:[#allocation25_spill]] }
  0x67   : > { %s2607_s29 = scalar_lea.hbm %s3402_s26, 1024 }
  0x68   : > { %p2608_p3 = scmp.ne.s32.totalorder %s3402_s26, %s2607_s29  ;;  %p2614_p12 = scmp.lt.u32.totalorder %s2607_s29, %s3402_s26 }
  0x6a   : > { %p2610_p4 = pnand %p2608_p3, %p2943_p8 }
  0x6c   : > { %p2611_p11 = pneg %p2610_p4 }
  0x6e   : > { %p2616_p13 = pnand %p2614_p12, %p2611_p11 }
  0x70   : > { %2619 = shalt.err (!%p2616_p13)
}
  0x71   : > { %s2620_s1 = scalar_lea.vmem %s407_s21, 1024  ;;  %p2628_p7 = scmp.lt.s32.totalorder %s407_s21, %s407_s21 }
  0x72   : > { %p2621_p0 = scmp.ne.s32.totalorder %s407_s21, %s2620_s1  ;;  %p2629_p9 = scmp.lt.s32.totalorder %s2620_s1, %s2620_s1 }
  0x74   : > { %p2623_p1 = pnand %p2621_p0, %p2943_p8  ;;  %p2630_p2 = por %p2629_p9, %p2628_p7 }
  0x76   : > { %p2624_p5 = pneg %p2623_p1 }
  0x78   : > { %p2631_p10 = pnand %p2630_p2, %p2624_p5 }
  0x7a   : > { %2634 = shalt.err (!%p2631_p10)
}
  0x7b   : > { %s3403_s30 = smov 64   ;;  %s2813_s19 = smov [#allocation8]  }
  0x7c   : > { %2364 = dma.hbm_to_vmem [thread:$0]  (!%p2929_p6), %s3402_s26, 1024, %s407_s21, [#allocation4], %s3403_s30, %s3403_s30, %s2809_s18  }
  0x7d   : > { %s432_s20 = sshll.u32 %s2813_s19, 4  ;;  %s2814_s29 = smov [#allocation11]   ;;  %s433_s20 = int_to_ptr.vmem [resolvable:$true] %s432_s20 }
  0x7e   : > { %s458_s0 = sshll.u32 %s2814_s29, 4  ;;  %s2635_s1 = scalar_lea.hbm %s3366_s2, 2048  ;;  %s459_s0 = int_to_ptr.vmem [resolvable:$true] %s458_s0 }
  0x7f   : > { %p2636_p3 = scmp.ne.s32.totalorder %s3366_s2, %s2635_s1  ;;  %p2642_p12 = scmp.lt.u32.totalorder %s2635_s1, %s3366_s2 }
  0x81   : > { %p2638_p4 = pnand %p2636_p3, %p2943_p8 }
  0x83   : > { %p2639_p11 = pneg %p2638_p4 }
  0x85   : > { %p2644_p13 = pnand %p2642_p12, %p2639_p11 }
  0x87   : > { %2647 = shalt.err (!%p2644_p13)
}
  0x88   : > { %s2648_s21 = scalar_lea.vmem %s433_s20, 2048  ;;  %p2656_p7 = scmp.lt.s32.totalorder %s433_s20, %s433_s20 }
  0x89   : > { %p2649_p0 = scmp.ne.s32.totalorder %s433_s20, %s2648_s21  ;;  %p2657_p9 = scmp.lt.s32.totalorder %s2648_s21, %s2648_s21 }
  0x8b   : > { %p2651_p1 = pnand %p2649_p0, %p2943_p8  ;;  %p2658_p2 = por %p2657_p9, %p2656_p7 }
  0x8d   : > { %p2652_p5 = pneg %p2651_p1 }
  0x8f   : > { %p2659_p10 = pnand %p2658_p2, %p2652_p5 }
  0x91   : > { %2662 = shalt.err (!%p2659_p10)
}
  0x92   : > { %s3404_s13 = smov 8   ;;  %s3405_s15 = smov 128  }
  0x93   : > { %2370 = dma.hbm_to_vmem [thread:$0]  (!%p2929_p6), %s3366_s2, 2048, %s433_s20, [#allocation7], %s3405_s15, %s3405_s15, %s3404_s13  }
  0x94   : > { %s2663_s25 = scalar_lea.hbm %s3368_s4, 1024 }
  0x95   : > { %p2664_p3 = scmp.ne.s32.totalorder %s3368_s4, %s2663_s25  ;;  %p2670_p12 = scmp.lt.u32.totalorder %s2663_s25, %s3368_s4 }
  0x97   : > { %p2666_p4 = pnand %p2664_p3, %p2943_p8 }
  0x99   : > { %p2667_p11 = pneg %p2666_p4 }
  0x9b   : > { %p2672_p13 = pnand %p2670_p12, %p2667_p11 }
  0x9d   : > { %2675 = shalt.err (!%p2672_p13)
}
  0x9e   : > { %s2676_s3 = scalar_lea.vmem %s459_s0, 1024  ;;  %p2684_p7 = scmp.lt.s32.totalorder %s459_s0, %s459_s0 }
  0x9f   : > { %p2677_p0 = scmp.ne.s32.totalorder %s459_s0, %s2676_s3  ;;  %p2685_p9 = scmp.lt.s32.totalorder %s2676_s3, %s2676_s3 }
  0xa1   : > { %p2679_p1 = pnand %p2677_p0, %p2943_p8  ;;  %p2686_p2 = por %p2685_p9, %p2684_p7 }
  0xa3   : > { %p2680_p5 = pneg %p2679_p1 }
  0xa5   : > { %p2687_p10 = pnand %p2686_p2, %p2680_p5 }
  0xa7   : > { %2690 = shalt.err (!%p2687_p10)
}
  0xa8   : > { %2376 = dma.hbm_to_vmem [thread:$0]  (!%p2929_p6), %s3368_s4, 1024, %s459_s0, [#allocation10], %s3403_s30, %s3403_s30, %s2809_s18  }
  0xa9   : > { %s2815_s15 = smov [#allocation14]   ;;  %s2816_s19 = smov [#allocation15]  }
  0xaa   : > { %s499_s16 = sshll.u32 %s2815_s15, 4  ;;  %s518_s29 = sshll.u32 %s2816_s19, 4  ;;  %s500_s16 = int_to_ptr.vmem [resolvable:$true] %s499_s16  ;;  %s519_s29 = int_to_ptr.vmem [resolvable:$true] %s518_s29 }
  0xab   : > { %s2691_s1 = scalar_lea.hbm %s3375_s11, 1024 }
  0xac   : > { %p2692_p3 = scmp.ne.s32.totalorder %s3375_s11, %s2691_s1  ;;  %p2698_p12 = scmp.lt.u32.totalorder %s2691_s1, %s3375_s11 }
  0xae   : > { %p2694_p4 = pnand %p2692_p3, %p2943_p8 }
  0xb0   : > { %p2695_p11 = pneg %p2694_p4 }
  0xb2   : > { %p2700_p13 = pnand %p2698_p12, %p2695_p11 }
  0xb4   : > { %2703 = shalt.err (!%p2700_p13)
}
  0xb5   : > { %s2704_s0 = scalar_lea.vmem %s500_s16, 1024  ;;  %p2712_p7 = scmp.lt.s32.totalorder %s500_s16, %s500_s16 }
  0xb6   : > { %p2705_p0 = scmp.ne.s32.totalorder %s500_s16, %s2704_s0  ;;  %p2713_p9 = scmp.lt.s32.totalorder %s2704_s0, %s2704_s0 }
  0xb8   : > { %p2707_p1 = pnand %p2705_p0, %p2943_p8  ;;  %p2714_p2 = por %p2713_p9, %p2712_p7 }
  0xba   : > { %p2708_p5 = pneg %p2707_p1 }
  0xbc   : > { %p2715_p10 = pnand %p2714_p2, %p2708_p5 }
  0xbe   : > { %2718 = shalt.err (!%p2715_p10)
}
  0xbf   : > { %2382 = dma.hbm_to_vmem [thread:$0]  (!%p2929_p6), %s3375_s11, 1024, %s500_s16, [#allocation13], %s3403_s30, %s3403_s30, %s2809_s18  }
  0xc0   : > { %s2719_s27 = scalar_lea.hbm %s3378_s14, 1024 }
  0xc1   : > { %p2720_p3 = scmp.ne.s32.totalorder %s3378_s14, %s2719_s27  ;;  %p2726_p12 = scmp.lt.u32.totalorder %s2719_s27, %s3378_s14 }
  0xc3   : > { %p2722_p4 = pnand %p2720_p3, %p2943_p8 }
  0xc5   : > { %p2723_p11 = pneg %p2722_p4 }
  0xc7   : > { %p2728_p13 = pnand %p2726_p12, %p2723_p11 }
  0xc9   : > { %2731 = shalt.err (!%p2728_p13)
}
  0xca   : > { %s2732_s20 = scalar_lea.vmem %s519_s29, 1024  ;;  %p2740_p7 = scmp.lt.s32.totalorder %s519_s29, %s519_s29 }
  0xcb   : > { %p2733_p0 = scmp.ne.s32.totalorder %s519_s29, %s2732_s20  ;;  %p2741_p9 = scmp.lt.s32.totalorder %s2732_s20, %s2732_s20 }
  0xcd   : > { %p2735_p1 = pnand %p2733_p0, %p2943_p8  ;;  %p2742_p2 = por %p2741_p9, %p2740_p7 }
  0xcf   : > { %p2736_p5 = pneg %p2735_p1 }
  0xd1   : > { %p2743_p10 = pnand %p2742_p2, %p2736_p5 }
  0xd3   : > { %2746 = shalt.err (!%p2743_p10)
}
  0xd4   : > { %2385 = dma.hbm_to_vmem [thread:$0]  (!%p2929_p6), %s3378_s14, 1024, %s519_s29, [#allocation16], %s3403_s30, %s3403_s30, %s2809_s18  }
  0xd5   : > { %p3406_p3 = scmp.ne.s32.totalorder %s3397_s23, 0 }
  0xd6   : > { %p3407_p8 = scmp.eq.s32.totalorder (!%p3406_p3), %s2911_s22, 0 }
  0xd7   : > { %537 = sbr.rel (%p3406_p3) target bundleno = 1798 (0x706), region = 84 }
  0xde   : > { %2778 = dma.done.wait (%p3407_p8), [#allocation4], 1024   ;;  %p3408_p4 = pmov %p3407_p8 }
  0xe0   : > { %2780 = vsyncadd (%p3408_p4), [#allocation4], 4294966272  ;;  %p3409_p11 = pmov %p3408_p4 }
  0xe1   : > { %p3410_p12 = pmov %p3408_p4 }
  0xe2   : > { %2782 = dma.done.wait (%p3409_p11), [#allocation7], 3072  }
  0xe3   : > { %2784 = vsyncadd (%p3410_p12), [#allocation7], 4294964224  ;;  %p3411_p13 = pmov %p3408_p4 }
  0xe4   : > { %p3412_p6 = pmov %p3408_p4 }
  0xe5   : > { %2786 = dma.done.wait (%p3411_p13), [#allocation10], 2048  }
  0xe6   : > { %2788 = vsyncadd (%p3412_p6), [#allocation10], 4294965248  ;;  %p3413_p0 = pmov %p3408_p4 }
  0xe8   : > { %2790 = dma.done.wait (%p3413_p0), [#allocation13], 9216   ;;  %p3414_p1 = pmov %p3413_p0 }
  0xe9   : > { %p3415_p5 = pmov %p3413_p0 }
  0xea   : > { %2792 = vsyncadd (%p3414_p1), [#allocation13], 4294958080 }
  0xeb   : > { %2794 = dma.done.wait (%p3415_p5), [#allocation16], 1024   ;;  %p3416_p7 = pmov %p3413_p0 }
  0xec   : > { %p3417_p9 = scmp.ne.s32.totalorder %s2911_s22, 0 }
  0xed   : > { %2796 = vsyncadd (%p3416_p7), [#allocation16], 4294966272  ;;  %v2427_v0 = vld [vmem:[#allocation11] sm:$0xff] (!%p3417_p9)   ;;  %v2428_v1 = vld [vmem:[#allocation11 + $0x8] sm:$0xff] (!%p3417_p9)  }
  0xee   : > { %609 = sbr.rel (%p3417_p9) target bundleno = 503 (0x1f7), region = 120  ;;  %2185 = vmatprep.subr.bf16.mxu0 (!%p3417_p9), %v2427_v0  ;;  %2309 = vmatprep.subr.bf16.mxu1 (!%p3417_p9), %v2427_v0  ;;  %v2429_v2 = vld [vmem:[#allocation11 + $0x10] sm:$0xff] (!%p3417_p9)   ;;  %v2430_v3 = vld [vmem:[#allocation11 + $0x18] sm:$0xff] (!%p3417_p9)   ;;  %v2435_v4 = vld [vmem:[#allocation3] sm:$0xff] (!%p3417_p9)  }
  0xef   : > { %2186 = vmatpush3.bf16.msra.mxu0 (!%p3417_p9), %v2427_v0  ;;  %2317 = vmatpush3.bf16.msra.mxu1 (!%p3417_p9), %v2427_v0  ;;  %v2436_v5 = vld [vmem:[#allocation3 + $0x20] sm:$0xff] (!%p3417_p9)   ;;  %v2432_v7 = vld [vmem:[#allocation11 + $0x28] sm:$0xff] (!%p3417_p9)   ;;  %v2433_v8 = vld [vmem:[#allocation11 + $0x30] sm:$0xff] (!%p3417_p9)  }
  0xf0   : > { %2187 = vmatprep.subr.bf16.mxu0 (!%p3417_p9), %v2428_v1  ;;  %2310 = vmatprep.subr.bf16.mxu1 (!%p3417_p9), %v2428_v1  ;;  %v2431_v6 = vld [vmem:[#allocation11 + $0x20] sm:$0xff] (!%p3417_p9)   ;;  %v2434_v9 = vld [vmem:[#allocation11 + $0x38] sm:$0xff] (!%p3417_p9)   ;;  %v2437_v10 = vld [vmem:[#allocation3 + $0x8] sm:$0xff] (!%p3417_p9)  }
  0xf1   : > { %2201 = vmatprep.mubr.bf16.mxu0 (!%p3417_p9), %v2435_v4  ;;  %2209 = vmatprep.mubr.bf16.mxu1 (!%p3417_p9), %v2436_v5  ;;  %v2438_v11 = vld [vmem:[#allocation3 + $0x28] sm:$0xff] (!%p3417_p9)   ;;  %v2439_v12 = vld [vmem:[#allocation3 + $0x10] sm:$0xff] (!%p3417_p9)   ;;  %v2441_v14 = vld [vmem:[#allocation3 + $0x18] sm:$0xff] (!%p3417_p9)  }
  0xf2   : > { %v2440_v13 = vld [vmem:[#allocation3 + $0x30] sm:$0xff] (!%p3417_p9)   ;;  %v2442_v15 = vld [vmem:[#allocation3 + $0x38] sm:$0xff] (!%p3417_p9)   ;;  %v2443_v16 = vld [vmem:[#allocation9] sm:$0xff] (!%p3417_p9)  }
  0xf3   : > { %2188 = vmatpush3.bf16.msra.mxu0 (!%p3417_p9), %v2428_v1  ;;  %2318 = vmatpush3.bf16.msra.mxu1 (!%p3417_p9), %v2428_v1  ;;  %v2444_v17 = vld [vmem:[#allocation9 + $0x8] sm:$0xff] (!%p3417_p9)   ;;  %v2445_v18 = vld [vmem:[#allocation9 + $0x10] sm:$0xff] (!%p3417_p9)   ;;  %v2446_v19 = vld [vmem:[#allocation9 + $0x18] sm:$0xff] (!%p3417_p9)   ;;  %977 = vst [vmem:[#allocation2 + $0x8] sm:$0xff] (!%p3417_p9), %v2443_v16 }
  0xf4   : > { %2189 = vmatprep.subr.bf16.mxu0 (!%p3417_p9), %v2429_v2  ;;  %2311 = vmatprep.subr.bf16.mxu1 (!%p3417_p9), %v2429_v2  ;;  %v2447_v20 = vld [vmem:[#allocation9 + $0x20] sm:$0xff] (!%p3417_p9)   ;;  %v2448_v21 = vld [vmem:[#allocation9 + $0x28] sm:$0xff] (!%p3417_p9)   ;;  %v2449_v22 = vld [vmem:[#allocation9 + $0x30] sm:$0xff] (!%p3417_p9)   ;;  %978 = vst [vmem:[#allocation2 + $0x18] sm:$0xff] (!%p3417_p9), %v2444_v17 }
  0xf5   : > { %v2450_v23 = vld [vmem:[#allocation9 + $0x38] sm:$0xff]   ;;  %979 = vst [vmem:[#allocation2 + $0x28] sm:$0xff] %v2445_v18  ;;  %980 = vst [vmem:[#allocation2 + $0x38] sm:$0xff] %v2446_v19  ;;  %v2047_v24 = vld [vmem:[%s3369_s5] ss:$0 sm:$0xff] }
  0xf6   : > { %981 = vst [vmem:[#allocation2 + $0x48] sm:$0xff] %v2447_v20  ;;  %982 = vst [vmem:[#allocation2 + $0x58] sm:$0xff] %v2448_v21  ;;  %v3150_v26 = vld [vmem:[%s3370_s6] ss:$0 sm:$0xff] }
  0xf7   : > { %2190 = vmatpush3.bf16.msra.mxu0 %v2429_v2  ;;  %2319 = vmatpush3.bf16.msra.mxu1 %v2429_v2  ;;  %983 = vst [vmem:[#allocation2 + $0x68] sm:$0xff] %v2449_v22  ;;  %984 = vst [vmem:[#allocation2 + $0x78] sm:$0xff] %v2450_v23 }
  0xf8   : > { %2191 = vmatprep.subr.bf16.mxu0 %v2430_v3  ;;  %2312 = vmatprep.subr.bf16.mxu1 %v2430_v3 }
  0xfb   : > { %2192 = vmatpush3.bf16.msra.mxu0 %v2430_v3  ;;  %2320 = vmatpush3.bf16.msra.mxu1 %v2430_v3 }
  0xfc   : > { %2193 = vmatprep.subr.bf16.mxu0 %v2431_v6  ;;  %2313 = vmatprep.subr.bf16.mxu1 %v2431_v6 }
  0xff   : > { %2194 = vmatpush3.bf16.msra.mxu0 %v2431_v6  ;;  %2321 = vmatpush3.bf16.msra.mxu1 %v2431_v6 }
 0x100   : > { %2195 = vmatprep.subr.bf16.mxu0 %v2432_v7  ;;  %2314 = vmatprep.subr.bf16.mxu1 %v2432_v7 }
 0x103   : > { %2196 = vmatpush3.bf16.msra.mxu0 %v2432_v7  ;;  %2322 = vmatpush3.bf16.msra.mxu1 %v2432_v7 }
 0x104   : > { %2197 = vmatprep.subr.bf16.mxu0 %v2433_v8  ;;  %2315 = vmatprep.subr.bf16.mxu1 %v2433_v8 }
 0x107   : > { %2198 = vmatpush3.bf16.msra.mxu0 %v2433_v8  ;;  %2323 = vmatpush3.bf16.msra.mxu1 %v2433_v8 }
 0x108   : > { %2199 = vmatprep.subr.bf16.mxu0 %v2434_v9  ;;  %2316 = vmatprep.subr.bf16.mxu1 %v2434_v9 }
 0x10b   : > { %2200 = vmatpush3.bf16.msra.mxu0 %v2434_v9  ;;  %2324 = vmatpush3.bf16.msra.mxu1 %v2434_v9 }
 0x10e   : > { %2202 = vmatmul.mubr.bf16.vlgmr.msra.gmra.mrb[0].mxu0 %v2437_v10  ;;  %2210 = vmatmul.mubr.bf16.vlgmr.msra.gmra.mrb[0].mxu1 %v2438_v11 }
 0x10f   : > { %2205 = vmatprep.mubr.bf16.mxu0 %v2439_v12  ;;  %2213 = vmatprep.mubr.bf16.mxu1 %v2440_v13 }
 0x116   : > { %2206 = vmatmul.mubr.bf16.gmra.mrb[4].mxu0 %v2441_v14  ;;  %2214 = vmatmul.mubr.bf16.gmra.mrb[4].mxu1 %v2442_v15 }
 0x1e1   : > { %v2203_v25 = vpop.f32.mrb[0].mxu0  ;;  %v2211_v27 = vpop.f32.mrb[0].mxu1 }
 0x1e2   : > { %v844_v28 = vmul.f32 %v2203_v25, %v2047_v24  ;;  %v852_v29 = vmul.f32 %v2211_v27, %v2047_v24  ;;  %v772_v30 = vpop.f32.mrb[1].mxu0  ;;  %v804_v31 = vpop.f32.mrb[1].mxu1 }
 0x1e3   : > { %v842_v32 = vmul.f32 %v2047_v24, %v772_v30  ;;  %v850_v33 = vmul.f32 %v2047_v24, %v804_v31  ;;  %v2204_v34 = vpop.f32.mrb[2].mxu0  ;;  %v2212_v35 = vpop.f32.mrb[2].mxu1 }
 0x1e4   : > { %v867_v36 = vadd.f32 %v3150_v26, %v844_v28  ;;  %v875_v37 = vadd.f32 %v3150_v26, %v852_v29  ;;  %v845_v38 = vmul.f32 %v2204_v34, %v2047_v24  ;;  %v853_v39 = vmul.f32 %v2212_v35, %v2047_v24  ;;  %v775_v40 = vpop.f32.mrb[3].mxu0  ;;  %v807_v41 = vpop.f32.mrb[3].mxu1 }
 0x1e5   : > { %v865_v42 = vadd.f32 %v3150_v26, %v842_v32  ;;  %v873_v43 = vadd.f32 %v3150_v26, %v850_v33  ;;  %v843_v44 = vmul.f32 %v2047_v24, %v775_v40  ;;  %v851_v45 = vmul.f32 %v2047_v24, %v807_v41 }
 0x1e6   : > { %v868_v46 = vadd.f32 %v3150_v26, %v845_v38  ;;  %v876_v47 = vadd.f32 %v3150_v26, %v853_v39  ;;  %v883_v50 = vmax.f32 %v867_v36, 0.0  ;;  %v891_v51 = vmax.f32 %v875_v37, 0.0 }
 0x1e7   : > { %v866_v48 = vadd.f32 %v3150_v26, %v843_v44  ;;  %v874_v49 = vadd.f32 %v3150_v26, %v851_v45  ;;  %v881_v54 = vmax.f32 %v865_v42, 0.0  ;;  %v889_v55 = vmax.f32 %v873_v43, 0.0 }
 0x1e8   : > { %v884_v52 = vmax.f32 %v868_v46, 0.0  ;;  %v892_v53 = vmax.f32 %v876_v47, 0.0 }
 0x1e9   : > { %v882_v56 = vmax.f32 %v866_v48, 0.0  ;;  %v890_v57 = vmax.f32 %v874_v49, 0.0  ;;  %v2207_v58 = vpop.f32.mrb[4].mxu0  ;;  %v2215_v59 = vpop.f32.mrb[4].mxu1 }
 0x1ea   : > { %v898_v60 = vpack.c.bf16 %v884_v52, %v883_v50  ;;  %v902_v61 = vpack.c.bf16 %v892_v53, %v891_v51  ;;  %v848_v62 = vmul.f32 %v2207_v58, %v2047_v24  ;;  %v856_v63 = vmul.f32 %v2215_v59, %v2047_v24  ;;  %v788_v0 = vpop.f32.mrb[5].mxu0  ;;  %v820_v1 = vpop.f32.mrb[5].mxu1 }
 0x1eb   : > { %v897_v2 = vpack.c.bf16 %v882_v56, %v881_v54  ;;  %v901_v3 = vpack.c.bf16 %v890_v57, %v889_v55  ;;  %v846_v4 = vmul.f32 %v2047_v24, %v788_v0  ;;  %v854_v5 = vmul.f32 %v2047_v24, %v820_v1  ;;  %v2208_v6 = vpop.f32.mrb[6].mxu0  ;;  %v2216_v7 = vpop.f32.mrb[6].mxu1 }
 0x1ec   : > { %906 = vst [vmem:[#allocation2 + $0x10] sm:$0xff] %v898_v60  ;;  %910 = vst [vmem:[#allocation2 + $0x50] sm:$0xff] %v902_v61  ;;  %v871_v8 = vadd.f32 %v3150_v26, %v848_v62  ;;  %v879_v9 = vadd.f32 %v3150_v26, %v856_v63  ;;  %v849_v10 = vmul.f32 %v2208_v6, %v2047_v24  ;;  %v791_v12 = vpop.f32.mrb[7].mxu0  ;;  %v823_v13 = vpop.f32.mrb[7].mxu1 }
 0x1ed   : > { %v857_v11 = vmul.f32 %v2216_v7, %v2047_v24  ;;  %905 = vst [vmem:[#allocation2] sm:$0xff] %v897_v2  ;;  %909 = vst [vmem:[#allocation2 + $0x40] sm:$0xff] %v901_v3  ;;  %v869_v14 = vadd.f32 %v3150_v26, %v846_v4  ;;  %v877_v15 = vadd.f32 %v3150_v26, %v854_v5 }
 0x1ee   : > { %v847_v16 = vmul.f32 %v2047_v24, %v791_v12  ;;  %v855_v17 = vmul.f32 %v2047_v24, %v823_v13  ;;  %v872_v18 = vadd.f32 %v3150_v26, %v849_v10  ;;  %v887_v22 = vmax.f32 %v871_v8, 0.0 }
 0x1ef   : > { %v880_v19 = vadd.f32 %v3150_v26, %v857_v11  ;;  %v895_v23 = vmax.f32 %v879_v9, 0.0  ;;  %v885_v28 = vmax.f32 %v869_v14, 0.0  ;;  %v893_v29 = vmax.f32 %v877_v15, 0.0 }
 0x1f0   : > { %v870_v20 = vadd.f32 %v3150_v26, %v847_v16  ;;  %v878_v21 = vadd.f32 %v3150_v26, %v855_v17  ;;  %v888_v25 = vmax.f32 %v872_v18, 0.0 }
 0x1f1   : > { %v896_v27 = vmax.f32 %v880_v19, 0.0 }
 0x1f2   : > { %v886_v30 = vmax.f32 %v870_v20, 0.0  ;;  %v894_v31 = vmax.f32 %v878_v21, 0.0  ;;  %v900_v32 = vpack.c.bf16 %v888_v25, %v887_v22 }
 0x1f3   : > { %v904_v33 = vpack.c.bf16 %v896_v27, %v895_v23 }
 0x1f4   : > { %v899_v34 = vpack.c.bf16 %v886_v30, %v885_v28  ;;  %v903_v24 = vpack.c.bf16 %v894_v31, %v893_v29  ;;  %908 = vst [vmem:[#allocation2 + $0x30] sm:$0xff] %v900_v32 }
 0x1f5   : > { %912 = vst [vmem:[#allocation2 + $0x70] sm:$0xff] %v904_v33 }
 0x1f6   : > { %907 = vst [vmem:[#allocation2 + $0x20] sm:$0xff] %v899_v34  ;;  %911 = vst [vmem:[#allocation2 + $0x60] sm:$0xff] %v903_v24 }
 0x1f7 PF: > { %s2125_s30 = sshll.u32 %s2911_s22, 8  ;;  %v985_v3 = vld [vmem:[#allocation2] sm:$0xff]  ;;  %v987_v5 = vld [vmem:[#allocation2 + $0x10] sm:$0xff]  ;;  %v994_v10 = vld [vmem:[#allocation2 + $0x48] sm:$0xff]  ;;  %s1526_s19 = scalar_lea.vmem %s3372_s8, %s2911_s22 }
 0x1f8   : > { %s3169_s29 = scalar_lea.vmem [#allocation12], %s2125_s30  ;;  %v993_v11 = vld [vmem:[#allocation2 + $0x40] sm:$0xff]  ;;  %v996_v12 = vld [vmem:[#allocation2 + $0x58] sm:$0xff]  ;;  %v995_v13 = vld [vmem:[#allocation2 + $0x50] sm:$0xff]  ;;  %s1550_s1 = scalar_lea.vmem %s3373_s9, %s2911_s22 }
 0x1f9   : > { %v2451_v35 = vld [vmem:[%s3169_s29 + $0x4] ss:$8 sps:$4 sm:$0xff]   ;;  %v2453_v36 = vld [vmem:[%s3169_s29] ss:$8 sps:$4 sm:$0xff]   ;;  %v2454_v37 = vld [vmem:[%s3169_s29 + $0x14] ss:$8 sps:$4 sm:$0xff]  }
 0x1fa   : > { %1196 = vmatprep.subr.bf16.mxu0 %v2451_v35  ;;  %v2456_v38 = vld [vmem:[%s3169_s29 + $0x10] ss:$8 sps:$4 sm:$0xff]   ;;  %v2457_v39 = vld [vmem:[%s3169_s29 + $0x24] ss:$8 sps:$4 sm:$0xff]   ;;  %v2459_v40 = vld [vmem:[%s3169_s29 + $0x20] ss:$8 sps:$4 sm:$0xff]  }
 0x1fb   : > { %1197 = vmatpush1.bf16.msra.mxu0 %v2453_v36  ;;  %v2460_v41 = vld [vmem:[%s3169_s29 + $0x34] ss:$8 sps:$4 sm:$0xff]   ;;  %v2462_v42 = vld [vmem:[%s3169_s29 + $0x30] ss:$8 sps:$4 sm:$0xff]   ;;  %v2463_v43 = vld [vmem:[%s3169_s29 + $0x44] ss:$8 sps:$4 sm:$0xff]  }
 0x1fc   : > { %v986_v26 = vld [vmem:[#allocation2 + $0x8] sm:$0xff]  ;;  %1198 = vmatprep.subr.bf16.mxu0 %v2454_v37  ;;  %v2466_v45 = vld [vmem:[%s3169_s29 + $0x54] ss:$8 sps:$4 sm:$0xff]   ;;  %v2468_v46 = vld [vmem:[%s3169_s29 + $0x50] ss:$8 sps:$4 sm:$0xff]   ;;  %p2101_p2 = scmp.ne.s32.totalorder %s2911_s22, 1 }
 0x1fd   : > { %1228 = vmatprep.mubr.bf16.mxu0 %v986_v26  ;;  %v2465_v44 = vld [vmem:[%s3169_s29 + $0x40] ss:$8 sps:$4 sm:$0xff]   ;;  %v2469_v47 = vld [vmem:[%s3169_s29 + $0x64] ss:$8 sps:$4 sm:$0xff]   ;;  %v2472_v49 = vld [vmem:[%s3169_s29 + $0x74] ss:$8 sps:$4 sm:$0xff]  }
 0x1fe   : > { %v2471_v48 = vld [vmem:[%s3169_s29 + $0x60] ss:$8 sps:$4 sm:$0xff]   ;;  %v2474_v50 = vld [vmem:[%s3169_s29 + $0x70] ss:$8 sps:$4 sm:$0xff]   ;;  %v2475_v51 = vld [vmem:[%s3169_s29 + $0x84] ss:$8 sps:$4 sm:$0xff]  }
 0x1ff   : > { %1199 = vmatpush1.bf16.msra.mxu0 %v2456_v38  ;;  %v2477_v52 = vld [vmem:[%s3169_s29 + $0x80] ss:$8 sps:$4 sm:$0xff]   ;;  %v2478_v53 = vld [vmem:[%s3169_s29 + $0x94] ss:$8 sps:$4 sm:$0xff]   ;;  %v2480_v54 = vld [vmem:[%s3169_s29 + $0x90] ss:$8 sps:$4 sm:$0xff]  }
 0x200   : > { %1200 = vmatprep.subr.bf16.mxu0 %v2457_v39  ;;  %v2481_v55 = vld [vmem:[%s3169_s29 + $0xa4] ss:$8 sps:$4 sm:$0xff]   ;;  %v2483_v56 = vld [vmem:[%s3169_s29 + $0xa0] ss:$8 sps:$4 sm:$0xff]   ;;  %v2484_v57 = vld [vmem:[%s3169_s29 + $0xb4] ss:$8 sps:$4 sm:$0xff]  }
 0x201   : > { %v2486_v58 = vld [vmem:[%s3169_s29 + $0xb0] ss:$8 sps:$4 sm:$0xff]   ;;  %v2487_v59 = vld [vmem:[%s3169_s29 + $0xc4] ss:$8 sps:$4 sm:$0xff]   ;;  %v2489_v60 = vld [vmem:[%s3169_s29 + $0xc0] ss:$8 sps:$4 sm:$0xff]  }
 0x202   : > { %v2490_v61 = vld [vmem:[%s3169_s29 + $0xd4] ss:$8 sps:$4 sm:$0xff]   ;;  %v2492_v62 = vld [vmem:[%s3169_s29 + $0xd0] ss:$8 sps:$4 sm:$0xff]   ;;  %v2493_v63 = vld [vmem:[%s3169_s29 + $0xe4] ss:$8 sps:$4 sm:$0xff]  }
 0x203   : > { %1201 = vmatpush1.bf16.msra.mxu0 %v2459_v40  ;;  %v2495_v0 = vld [vmem:[%s3169_s29 + $0xe0] ss:$8 sps:$4 sm:$0xff]   ;;  %v2496_v1 = vld [vmem:[%s3169_s29 + $0xf4] ss:$8 sps:$4 sm:$0xff]   ;;  %v2498_v2 = vld [vmem:[%s3169_s29 + $0xf0] ss:$8 sps:$4 sm:$0xff]  }
 0x204   : > { %1202 = vmatprep.subr.bf16.mxu0 %v2460_v41  ;;  %v988_v4 = vld [vmem:[#allocation2 + $0x18] sm:$0xff]  ;;  %v990_v6 = vld [vmem:[#allocation2 + $0x28] sm:$0xff]  ;;  %v989_v7 = vld [vmem:[#allocation2 + $0x20] sm:$0xff]  ;;  %vm2818_vm0 = vmmov (!%p2101_p2), 0   ;;  %s3418_s23 = sld [smem:[#allocation28_spill]] (!%p2101_p2)  ;;  %s3419_s18 = sld [smem:[#allocation29_spill]] (!%p2101_p2) }
 0x205   : > { %v992_v8 = vld [vmem:[#allocation2 + $0x38] sm:$0xff]  ;;  %v991_v9 = vld [vmem:[#allocation2 + $0x30] sm:$0xff]  ;;  %v998_v14 = vld [vmem:[#allocation2 + $0x68] sm:$0xff] }
 0x206   : > { %v997_v15 = vld [vmem:[#allocation2 + $0x60] sm:$0xff]  ;;  %v1000_v16 = vld [vmem:[#allocation2 + $0x78] sm:$0xff]  ;;  %v999_v17 = vld [vmem:[#allocation2 + $0x70] sm:$0xff] }
 0x207   : > { %1203 = vmatpush1.bf16.msra.mxu0 %v2462_v42  ;;  %v2499_v18 = vld [vmem:[#allocation6] sm:$0xff]  }
 0x208   : > { %1204 = vmatprep.subr.bf16.mxu0 %v2463_v43  ;;  %2233 = vmatprep.mubr.bf16.mxu1 %v2499_v18 }
 0x20b   : > { %1205 = vmatpush1.bf16.msra.mxu0 %v2465_v44 }
 0x20c   : > { %1206 = vmatprep.subr.bf16.mxu0 %v2466_v45 }
 0x20f   : > { %1207 = vmatpush1.bf16.msra.mxu0 %v2468_v46 }
 0x210   : > { %1208 = vmatprep.subr.bf16.mxu0 %v2469_v47 }
 0x213   : > { %1209 = vmatpush1.bf16.msra.mxu0 %v2471_v48 }
 0x214   : > { %1210 = vmatprep.subr.bf16.mxu0 %v2472_v49 }
 0x217   : > { %1211 = vmatpush1.bf16.msra.mxu0 %v2474_v50 }
 0x218   : > { %1212 = vmatprep.subr.bf16.mxu0 %v2475_v51 }
 0x21b   : > { %1213 = vmatpush1.bf16.msra.mxu0 %v2477_v52 }
 0x21c   : > { %1214 = vmatprep.subr.bf16.mxu0 %v2478_v53 }
 0x21f   : > { %1215 = vmatpush1.bf16.msra.mxu0 %v2480_v54 }
 0x220   : > { %1216 = vmatprep.subr.bf16.mxu0 %v2481_v55 }
 0x223   : > { %1217 = vmatpush1.bf16.msra.mxu0 %v2483_v56 }
 0x224   : > { %1218 = vmatprep.subr.bf16.mxu0 %v2484_v57 }
 0x227   : > { %1219 = vmatpush1.bf16.msra.mxu0 %v2486_v58 }
 0x228   : > { %1220 = vmatprep.subr.bf16.mxu0 %v2487_v59  ;;  %v2500_v59 = vld [vmem:[#allocation6 + $0x8] sm:$0xff]  }
 0x22b   : > { %1221 = vmatpush1.bf16.msra.mxu0 %v2489_v60  ;;  %v2501_v60 = vld [vmem:[#allocation6 + $0x10] sm:$0xff]  }
 0x22c   : > { %1222 = vmatprep.subr.bf16.mxu0 %v2490_v61  ;;  %v2502_v61 = vld [vmem:[#allocation6 + $0x18] sm:$0xff]  }
 0x22f   : > { %1223 = vmatpush1.bf16.msra.mxu0 %v2492_v62  ;;  %v2503_v62 = vld [vmem:[#allocation6 + $0x20] sm:$0xff]  }
 0x230   : > { %1224 = vmatprep.subr.bf16.mxu0 %v2493_v63  ;;  %v2504_v63 = vld [vmem:[#allocation6 + $0x28] sm:$0xff]  }
 0x233   : > { %1225 = vmatpush1.bf16.msra.mxu0 %v2495_v0  ;;  %v2505_v0 = vld [vmem:[#allocation6 + $0x30] sm:$0xff]  }
 0x234   : > { %1226 = vmatprep.subr.bf16.mxu0 %v2496_v1  ;;  %v2506_v1 = vld [vmem:[#allocation6 + $0x38] sm:$0xff]  }
 0x237   : > { %1227 = vmatpush1.bf16.msra.mxu0 %v2498_v2  ;;  %v1480_v2 = vld [vmem:[#allocation8 + $0x10] sm:$0xff] }
 0x23a   : > { %1229 = vmatmul.mubr.bf16.vlgmr.msra.gmra.mrb[0].mxu0 %v985_v3  ;;  %v1478_v3 = vld [vmem:[#allocation8] sm:$0xff] }
 0x23b   : > { %1238 = vmatprep.mubr.bf16.mxu0 %v988_v4 }
 0x242   : > { %1239 = vmatmul.mubr.bf16.gmra.mrb[4].mxu0 %v987_v5  ;;  %v1481_v5 = vld [vmem:[#allocation8 + $0x18] sm:$0xff] }
 0x243   : > { %1248 = vmatprep.mubr.bf16.mxu0 %v990_v6 }
 0x24a   : > { %1249 = vmatmul.mubr.bf16.gmra.mrb[8].mxu0 %v989_v7 }
 0x24b   : > { %1258 = vmatprep.mubr.bf16.mxu0 %v992_v8  ;;  %v1479_v8 = vld [vmem:[#allocation8 + $0x8] sm:$0xff] }
 0x252   : > { %1259 = vmatmul.mubr.bf16.gmra.mrb[12].mxu0 %v991_v9  ;;  %v3243_v9 = vld [vmem:[%s1526_s19] ss:$0 sm:$0xff] }
 0x253   : > { %1268 = vmatprep.mubr.bf16.mxu0 %v994_v10 }
 0x25a   : > { %1269 = vmatmul.mubr.bf16.gmra.mrb[16].mxu0 %v993_v11 }
 0x25b   : > { %1278 = vmatprep.mubr.bf16.mxu0 %v996_v12 }
 0x262   : > { %1279 = vmatmul.mubr.bf16.gmra.mrb[20].mxu0 %v995_v13 }
 0x263   : > { %1288 = vmatprep.mubr.bf16.mxu0 %v998_v14 }
 0x26a   : > { %1289 = vmatmul.mubr.bf16.gmra.mrb[24].mxu0 %v997_v15  ;;  %v3246_v15 = vld [vmem:[%s1550_s1] ss:$0 sm:$0xff] }
 0x26b   : > { %1298 = vmatprep.mubr.bf16.mxu0 %v1000_v16 }
 0x272   : > { %1299 = vmatmul.mubr.bf16.gmra.mrb[28].mxu0 %v999_v17 }
 0x30d   : > { %v3203_v19 = vpop.f32.mrb[0].mxu0 }
 0x30e   : > { %v1232_v20 = vpop.f32.mrb[1].mxu0 }
 0x30f   : > { %v3205_v21 = vpop.f32.mrb[2].mxu0 }
 0x310   : > { %v1236_v22 = vpop.f32.mrb[3].mxu0 }
 0x311   : > { %v1325_v23 = vpack.c.bf16 %v1236_v22, %v1232_v20 }
 0x313   : > { %2217 = vmatprep.subr.bf16.mxu1 %v1325_v23 }
 0x314   : > { %2218 = vmatpush3.bf16.msra.mxu1 %v1325_v23 }
 0x315   : > { %v3207_v25 = vpop.f32.mrb[4].mxu0 }
 0x316   : > { %v1242_v27 = vpop.f32.mrb[5].mxu0 }
 0x317   : > { %v3209_v28 = vpop.f32.mrb[6].mxu0 }
 0x318   : > { %v1246_v29 = vpop.f32.mrb[7].mxu0 }
 0x319   : > { %v1326_v30 = vpack.c.bf16 %v1246_v29, %v1242_v27  ;;  %v1484_v27 = vld [vmem:[#allocation8 + $0x30] sm:$0xff] }
 0x31b   : > { %2219 = vmatprep.subr.bf16.mxu1 %v1326_v30 }
 0x31c   : > { %2220 = vmatpush3.bf16.msra.mxu1 %v1326_v30  ;;  %v1482_v30 = vld [vmem:[#allocation8 + $0x20] sm:$0xff] }
 0x31d   : > { %v3211_v31 = vpop.f32.mrb[8].mxu0 }
 0x31e   : > { %v1252_v32 = vpop.f32.mrb[9].mxu0 }
 0x31f   : > { %v3213_v33 = vpop.f32.mrb[10].mxu0 }
 0x320   : > { %v1256_v34 = vpop.f32.mrb[11].mxu0 }
 0x321   : > { %v1327_v24 = vpack.c.bf16 %v1256_v34, %v1252_v32 }
 0x323   : > { %2221 = vmatprep.subr.bf16.mxu1 %v1327_v24 }
 0x324   : > { %2222 = vmatpush3.bf16.msra.mxu1 %v1327_v24  ;;  %v1485_v24 = vld [vmem:[#allocation8 + $0x38] sm:$0xff] }
 0x325   : > { %v3215_v26 = vpop.f32.mrb[12].mxu0 }
 0x326   : > { %v1262_v35 = vpop.f32.mrb[13].mxu0 }
 0x327   : > { %v3217_v36 = vpop.f32.mrb[14].mxu0 }
 0x328   : > { %v1266_v37 = vpop.f32.mrb[15].mxu0 }
 0x329   : > { %v1328_v38 = vpack.c.bf16 %v1266_v37, %v1262_v35 }
 0x32b   : > { %2223 = vmatprep.subr.bf16.mxu1 %v1328_v38 }
 0x32c   : > { %2224 = vmatpush3.bf16.msra.mxu1 %v1328_v38  ;;  %v1483_v38 = vld [vmem:[#allocation8 + $0x28] sm:$0xff] }
 0x32d   : > { %v3219_v39 = vpop.f32.mrb[16].mxu0 }
 0x32e   : > { %v1272_v40 = vpop.f32.mrb[17].mxu0 }
 0x32f   : > { %v3221_v41 = vpop.f32.mrb[18].mxu0 }
 0x330   : > { %v1276_v42 = vpop.f32.mrb[19].mxu0 }
 0x331   : > { %v1329_v43 = vpack.c.bf16 %v1276_v42, %v1272_v40 }
 0x333   : > { %2225 = vmatprep.subr.bf16.mxu1 %v1329_v43 }
 0x334   : > { %2226 = vmatpush3.bf16.msra.mxu1 %v1329_v43 }
 0x335   : > { %v3223_v44 = vpop.f32.mrb[20].mxu0 }
 0x336   : > { %v1282_v45 = vpop.f32.mrb[21].mxu0 }
 0x337   : > { %v3225_v46 = vpop.f32.mrb[22].mxu0 }
 0x338   : > { %v1286_v47 = vpop.f32.mrb[23].mxu0 }
 0x339   : > { %v1330_v48 = vpack.c.bf16 %v1286_v47, %v1282_v45 }
 0x33b   : > { %2227 = vmatprep.subr.bf16.mxu1 %v1330_v48 }
 0x33c   : > { %2228 = vmatpush3.bf16.msra.mxu1 %v1330_v48 }
 0x33d   : > { %v3227_v49 = vpop.f32.mrb[24].mxu0 }
 0x33e   : > { %v1292_v50 = vpop.f32.mrb[25].mxu0 }
 0x33f   : > { %v3229_v51 = vpop.f32.mrb[26].mxu0 }
 0x340   : > { %v1296_v52 = vpop.f32.mrb[27].mxu0 }
 0x341   : > { %v1331_v53 = vpack.c.bf16 %v1296_v52, %v1292_v50 }
 0x343   : > { %2229 = vmatprep.subr.bf16.mxu1 %v1331_v53 }
 0x344   : > { %2230 = vmatpush3.bf16.msra.mxu1 %v1331_v53 }
 0x345   : > { %v3231_v54 = vpop.f32.mrb[28].mxu0 }
 0x346   : > { %v1302_v55 = vpop.f32.mrb[29].mxu0 }
 0x347   : > { %v3233_v56 = vpop.f32.mrb[30].mxu0 }
 0x348   : > { %v1306_v57 = vpop.f32.mrb[31].mxu0 }
 0x349   : > { %v1332_v58 = vpack.c.bf16 %v1306_v57, %v1302_v55 }
 0x34b   : > { %2231 = vmatprep.subr.bf16.mxu1 %v1332_v58 }
 0x34c   : > { %2232 = vmatpush3.bf16.msra.mxu1 %v1332_v58 }
 0x34f   : > { %2234 = vmatmul.mubr.bf16.vlgmr.msra.gmra.mrb[0].mxu1 %v2500_v59 }
 0x350   : > { %2237 = vmatprep.mubr.bf16.mxu1 %v2501_v60 }
 0x357   : > { %2238 = vmatmul.mubr.bf16.gmra.mrb[4].mxu1 %v2502_v61 }
 0x358   : > { %2241 = vmatprep.mubr.bf16.mxu1 %v2503_v62 }
 0x35f   : > { %2242 = vmatmul.mubr.bf16.gmra.mrb[8].mxu1 %v2504_v63 }
 0x360   : > { %2245 = vmatprep.mubr.bf16.mxu1 %v2505_v0  ;;  %v1488_v0 = vld [vmem:[#allocation8 + $0x50] sm:$0xff] }
 0x367   : > { %2246 = vmatmul.mubr.bf16.gmra.mrb[12].mxu1 %v2506_v1 }
 0x422   : > { %v2235_v4 = vpop.f32.mrb[0].mxu1 }
 0x423   : > { %v1496_v6 = vmul.f32 %v2235_v4, %v1480_v2  ;;  %v1415_v7 = vpop.f32.mrb[1].mxu1  ;;  %v1486_v2 = vld [vmem:[#allocation8 + $0x40] sm:$0xff] }
 0x424   : > { %v1494_v10 = vmul.f32 %v1478_v3, %v1415_v7  ;;  %v2236_v11 = vpop.f32.mrb[2].mxu1 }
 0x425   : > { %v1512_v12 = vadd.f32 %v1496_v6, %v3207_v25  ;;  %v1497_v13 = vmul.f32 %v2236_v11, %v1481_v5  ;;  %v1418_v14 = vpop.f32.mrb[3].mxu1  ;;  %v1489_v5 = vld [vmem:[#allocation8 + $0x58] sm:$0xff] }
 0x426   : > { %v1510_v16 = vadd.f32 %v1494_v10, %v3203_v19  ;;  %v1495_v17 = vmul.f32 %v1479_v8, %v1418_v14  ;;  %v1487_v8 = vld [vmem:[#allocation8 + $0x48] sm:$0xff] }
 0x427   : > { %v1536_v18 = vmul.f32 %v3243_v9, %v1512_v12  ;;  %v1513_v20 = vadd.f32 %v1497_v13, %v3209_v28 }
 0x428   : > { %v1534_v22 = vmul.f32 %v3243_v9, %v1510_v16  ;;  %v1511_v23 = vadd.f32 %v1495_v17, %v3205_v21 }
 0x429   : > { %v1560_v29 = vadd.f32 %v3246_v15, %v1536_v18  ;;  %v1537_v25 = vmul.f32 %v3243_v9, %v1513_v20 }
 0x42a   : > { %v1558_v32 = vadd.f32 %v3246_v15, %v1534_v22  ;;  %v1535_v34 = vmul.f32 %v3243_v9, %v1511_v23  ;;  %v2239_v19 = vpop.f32.mrb[4].mxu1 }
 0x42b   : > { %v1561_v35 = vadd.f32 %v3246_v15, %v1537_v25  ;;  %v1500_v37 = vmul.f32 %v2239_v19, %v1484_v27  ;;  %v1431_v28 = vpop.f32.mrb[5].mxu1  ;;  %v1576_v43 = vmax.f32 %v1560_v29, 0.0  ;;  %v1492_v19 = vld [vmem:[#allocation8 + $0x70] sm:$0xff] }
 0x42c   : > { %v1559_v40 = vadd.f32 %v3246_v15, %v1535_v34  ;;  %v1498_v21 = vmul.f32 %v1482_v30, %v1431_v28  ;;  %v2240_v42 = vpop.f32.mrb[6].mxu1  ;;  %v1574_v52 = vmax.f32 %v1558_v32, 0.0 }
 0x42d   : > { %v1577_v45 = vmax.f32 %v1561_v35, 0.0  ;;  %v1516_v47 = vadd.f32 %v1500_v37, %v3215_v26  ;;  %v1501_v48 = vmul.f32 %v2240_v42, %v1485_v24  ;;  %v1434_v50 = vpop.f32.mrb[7].mxu1  ;;  %v1490_v35 = vld [vmem:[#allocation8 + $0x60] sm:$0xff]  ;;  %v1491_v42 = vld [vmem:[#allocation8 + $0x68] sm:$0xff] }
 0x42e   : > { %v1575_v53 = vmax.f32 %v1559_v40, 0.0  ;;  %v1514_v55 = vadd.f32 %v1498_v21, %v3211_v31  ;;  %v1499_v57 = vmul.f32 %v1483_v38, %v1434_v50  ;;  %v1493_v38 = vld [vmem:[#allocation8 + $0x78] sm:$0xff] }
 0x42f   : > { %v1591_v58 = vpack.c.bf16 %v1577_v45, %v1576_v43  ;;  %v1540_v59 = vmul.f32 %v3243_v9, %v1516_v47  ;;  %v1517_v60 = vadd.f32 %v1501_v48, %v3217_v36 }
 0x430   : > { %v1590_v61 = vpack.c.bf16 %v1575_v53, %v1574_v52  ;;  %v1538_v62 = vmul.f32 %v3243_v9, %v1514_v55  ;;  %v1515_v63 = vadd.f32 %v1499_v57, %v3213_v33 }
 0x431   : > { %1599 = vst [vmem:[#allocation2 + $0x10] sm:$0xff] %v1591_v58  ;;  %v1564_v26 = vadd.f32 %v3246_v15, %v1540_v59  ;;  %v1541_v1 = vmul.f32 %v3243_v9, %v1517_v60 }
 0x432   : > { %1598 = vst [vmem:[#allocation2] sm:$0xff] %v1590_v61  ;;  %v1562_v31 = vadd.f32 %v3246_v15, %v1538_v62  ;;  %v1539_v3 = vmul.f32 %v3243_v9, %v1515_v63  ;;  %v2243_v4 = vpop.f32.mrb[8].mxu1 }
 0x433   : > { %v1565_v36 = vadd.f32 %v3246_v15, %v1541_v1  ;;  %v1504_v6 = vmul.f32 %v2243_v4, %v1488_v0  ;;  %v1447_v7 = vpop.f32.mrb[9].mxu1  ;;  %v1580_v12 = vmax.f32 %v1564_v26, 0.0 }
 0x434   : > { %v1563_v33 = vadd.f32 %v3246_v15, %v1539_v3  ;;  %v1502_v10 = vmul.f32 %v1486_v2, %v1447_v7  ;;  %v2244_v11 = vpop.f32.mrb[10].mxu1  ;;  %v1578_v18 = vmax.f32 %v1562_v31, 0.0 }
 0x435   : > { %v1581_v13 = vmax.f32 %v1565_v36, 0.0  ;;  %v1520_v14 = vadd.f32 %v1504_v6, %v3223_v44  ;;  %v1505_v16 = vmul.f32 %v2244_v11, %v1489_v5  ;;  %v1450_v17 = vpop.f32.mrb[11].mxu1 }
 0x436   : > { %v1579_v20 = vmax.f32 %v1563_v33, 0.0  ;;  %v1518_v22 = vadd.f32 %v1502_v10, %v3219_v39  ;;  %v1503_v23 = vmul.f32 %v1487_v8, %v1450_v17  ;;  %v2817_v8 = vmov (!%p2101_p2), 0.0   ;;  %v2508_v33 = vld [vmem:[#allocation14 + $0x8] sm:$0xff] (!%p2101_p2)  }
 0x437   : > { %v1593_v27 = vpack.c.bf16 %v1581_v13, %v1580_v12  ;;  %v1544_v29 = vmul.f32 %v3243_v9, %v1520_v14  ;;  %v1521_v25 = vadd.f32 %v1505_v16, %v3225_v46  ;;  %2249 = vmatprep.subr.bf16.mxu0 (!%p2101_p2), %v2817_v8  ;;  %2265 = vmatprep.mubr.msk.bf16.mxu0 (!%p2101_p2), %vm2818_vm0, %v2817_v8  ;;  %v2509_v12 = vld [vmem:[#allocation14 + $0x10] sm:$0xff] (!%p2101_p2)   ;;  %v2510_v13 = vld [vmem:[#allocation14 + $0x18] sm:$0xff] (!%p2101_p2)   ;;  %v2511_v16 = vld [vmem:[#allocation14 + $0x20] sm:$0xff] (!%p2101_p2)  }
 0x438   : > { %v1592_v30 = vpack.c.bf16 %v1579_v20, %v1578_v18  ;;  %v1542_v32 = vmul.f32 %v3243_v9, %v1518_v22  ;;  %v1519_v34 = vadd.f32 %v1503_v23, %v3221_v41  ;;  %2269 = vmatprep.subr.bf16.mxu1 (!%p2101_p2), %v2817_v8  ;;  %2285 = vmatprep.mubr.msk.bf16.mxu1 (!%p2101_p2), %vm2818_vm0, %v2817_v8  ;;  %v2512_v18 = vld [vmem:[#allocation14 + $0x28] sm:$0xff] (!%p2101_p2)   ;;  %v2513_v22 = vld [vmem:[#allocation14 + $0x30] sm:$0xff] (!%p2101_p2)  }
 0x439   : > { %1601 = vst [vmem:[#allocation2 + $0x30] sm:$0xff] %v1593_v27  ;;  %v1568_v44 = vadd.f32 %v3246_v15, %v1544_v29  ;;  %v1545_v24 = vmul.f32 %v3243_v9, %v1521_v25  ;;  %v1611_v7 = vld [vmem:[#allocation2] sm:$0xff] (!%p2101_p2)  ;;  %v2514_v29 = vld [vmem:[#allocation14 + $0x38] sm:$0xff] (!%p2101_p2)  }
 0x43a   : > { %1600 = vst [vmem:[#allocation2 + $0x20] sm:$0xff] %v1592_v30  ;;  %v1566_v39 = vadd.f32 %v3246_v15, %v1542_v32  ;;  %v1543_v37 = vmul.f32 %v3243_v9, %v1519_v34  ;;  %v2247_v28 = vpop.f32.mrb[12].mxu1  ;;  %2250 = vmatpush3.bf16.msra.mxu0 (!%p2101_p2), %v1611_v7  ;;  %v1610_v27 = vld [vmem:[%s3374_s10] sm:$0xf] (!%p2101_p2)  ;;  %v2516_v30 = vld [vmem:[#allocation15 + $0x8] sm:$0xff] (!%p2101_p2)   ;;  %v2517_v32 = vld [vmem:[#allocation15 + $0x10] sm:$0xff] (!%p2101_p2)  }
 0x43b   : > { %v1569_v46 = vadd.f32 %v3246_v15, %v1545_v24  ;;  %v1508_v40 = vmul.f32 %v2247_v28, %v1492_v19  ;;  %v1463_v21 = vpop.f32.mrb[13].mxu1  ;;  %v1584_v47 = vmax.f32 %v1568_v44, 0.0  ;;  %2251 = vmatprep.subr.bf16.mxu0 (!%p2101_p2), %v2817_v8  ;;  %v2515_v25 = vld [vmem:[#allocation15] sm:$0xff] (!%p2101_p2)   ;;  %v2518_v34 = vld [vmem:[#allocation15 + $0x18] sm:$0xff] (!%p2101_p2)   ;;  %v2520_v44 = vld [vmem:[#allocation15 + $0x28] sm:$0xff] (!%p2101_p2)  }
 0x43c   : > { %v1567_v41 = vadd.f32 %v3246_v15, %v1543_v37  ;;  %v1506_v43 = vmul.f32 %v1490_v35, %v1463_v21  ;;  %v2248_v45 = vpop.f32.mrb[14].mxu1  ;;  %v1582_v55 = vmax.f32 %v1566_v39, 0.0  ;;  %v2519_v19 = vld [vmem:[#allocation15 + $0x20] sm:$0xff] (!%p2101_p2)  }
 0x43d   : > { %v1585_v48 = vmax.f32 %v1569_v46, 0.0  ;;  %v1524_v50 = vadd.f32 %v1508_v40, %v3231_v54  ;;  %v1509_v52 = vmul.f32 %v2248_v45, %v1493_v38  ;;  %v1466_v53 = vpop.f32.mrb[15].mxu1  ;;  %v2521_v38 = vld [vmem:[#allocation15 + $0x30] sm:$0xff] (!%p2101_p2)   ;;  %v2522_v46 = vld [vmem:[#allocation15 + $0x38] sm:$0xff] (!%p2101_p2)   ;;  %v2110_v40 = vld [vmem:[%s3376_s12] ss:$0 sm:$0xff] (!%p2101_p2) }
 0x43e   : > { %v1583_v57 = vmax.f32 %v1567_v41, 0.0  ;;  %v1522_v58 = vadd.f32 %v1506_v43, %v3227_v49  ;;  %v1507_v59 = vmul.f32 %v1491_v42, %v1466_v53  ;;  %v2111_v42 = vld [vmem:[%s3418_s23] ss:$0 sm:$0xff] (!%p2101_p2) }
 0x43f   : > { %v1595_v60 = vpack.c.bf16 %v1585_v48, %v1584_v47  ;;  %v1548_v61 = vmul.f32 %v3243_v9, %v1524_v50  ;;  %v1525_v62 = vadd.f32 %v1509_v52, %v3233_v56  ;;  %v2112_v53 = vld [vmem:[%s3419_s18] ss:$0 sm:$0xff] (!%p2101_p2) }
 0x440   : > { %v1594_v63 = vpack.c.bf16 %v1583_v57, %v1582_v55  ;;  %v1546_v0 = vmul.f32 %v3243_v9, %v1522_v58  ;;  %v1523_v26 = vadd.f32 %v1507_v59, %v3229_v51  ;;  %v1614_v11 = vld [vmem:[#allocation2 + $0x30] sm:$0xff] (!%p2101_p2) }
 0x441   : > { %1603 = vst [vmem:[#allocation2 + $0x50] sm:$0xff] %v1595_v60  ;;  %v1572_v54 = vadd.f32 %v3246_v15, %v1548_v61  ;;  %v1549_v1 = vmul.f32 %v3243_v9, %v1525_v62  ;;  %v1613_v10 = vld [vmem:[#allocation2 + $0x20] sm:$0xff] (!%p2101_p2) }
 0x442   : > { %1602 = vst [vmem:[#allocation2 + $0x40] sm:$0xff] %v1594_v63  ;;  %v1570_v2 = vadd.f32 %v3246_v15, %v1546_v0  ;;  %v1547_v49 = vmul.f32 %v3243_v9, %v1523_v26  ;;  %v1612_v9 = vld [vmem:[#allocation2 + $0x10] sm:$0xff] (!%p2101_p2) }
 0x443   : > { %v1573_v31 = vadd.f32 %v3246_v15, %v1549_v1  ;;  %v1588_v56 = vmax.f32 %v1572_v54, 0.0  ;;  %2252 = vmatpush3.bf16.msra.mxu0 (!%p2101_p2), %v1612_v9 }
 0x444   : > { %v1571_v3 = vadd.f32 %v3246_v15, %v1547_v49  ;;  %v1586_v5 = vmax.f32 %v1570_v2, 0.0  ;;  %1609 = sbr.rel (%p2101_p2) target bundleno = 1767 (0x6e7), region = 124  ;;  %v2507_v15 = vld [vmem:[#allocation14] sm:$0xff] (!%p2101_p2)   ;;  %2253 = vmatprep.subr.bf16.mxu0 (!%p2101_p2), %v2817_v8 }
 0x445   : > { %v1589_v4 = vmax.f32 %v1573_v31, 0.0  ;;  %2270 = vmatpush3.bf16.msra.mxu1 (!%p2101_p2), %v2507_v15 }
 0x446   : > { %v1587_v36 = vmax.f32 %v1571_v3, 0.0  ;;  %2271 = vmatprep.subr.bf16.mxu1 (!%p2101_p2), %v2817_v8 }
 0x447   : > { %v1597_v6 = vpack.c.bf16 %v1589_v4, %v1588_v56  ;;  %2254 = vmatpush3.bf16.msra.mxu0 (!%p2101_p2), %v1613_v10 }
 0x448   : > { %v1596_v51 = vpack.c.bf16 %v1587_v36, %v1586_v5  ;;  %2255 = vmatprep.subr.bf16.mxu0 (!%p2101_p2), %v2817_v8  ;;  %v1616_v17 = vld [vmem:[#allocation2 + $0x50] sm:$0xff] (!%p2101_p2) }
 0x449   : > { %1605 = vst [vmem:[#allocation2 + $0x70] sm:$0xff] %v1597_v6  ;;  %2272 = vmatpush3.bf16.msra.mxu1 (!%p2101_p2), %v2508_v33  ;;  %v1615_v14 = vld [vmem:[#allocation2 + $0x40] sm:$0xff] (!%p2101_p2) }
 0x44a   : > { %1604 = vst [vmem:[#allocation2 + $0x60] sm:$0xff] %v1596_v51  ;;  %2273 = vmatprep.subr.bf16.mxu1 (!%p2101_p2), %v2817_v8 }
 0x44b   : > { %2256 = vmatpush3.bf16.msra.mxu0 %v1614_v11 }
 0x44c   : > { %2257 = vmatprep.subr.bf16.mxu0 %v2817_v8 }
 0x44d   : > { %2274 = vmatpush3.bf16.msra.mxu1 %v2509_v12 }
 0x44e   : > { %2275 = vmatprep.subr.bf16.mxu1 %v2817_v8 }
 0x44f   : > { %2258 = vmatpush3.bf16.msra.mxu0 %v1615_v14 }
 0x450   : > { %2259 = vmatprep.subr.bf16.mxu0 %v2817_v8  ;;  %v1618_v23 = vld [vmem:[#allocation2 + $0x70] sm:$0xff] }
 0x451   : > { %2276 = vmatpush3.bf16.msra.mxu1 %v2510_v13  ;;  %v1617_v20 = vld [vmem:[#allocation2 + $0x60] sm:$0xff] }
 0x452   : > { %2277 = vmatprep.subr.bf16.mxu1 %v2817_v8 }
 0x453   : > { %2260 = vmatpush3.bf16.msra.mxu0 %v1616_v17 }
 0x454   : > { %2261 = vmatprep.subr.bf16.mxu0 %v2817_v8 }
 0x455   : > { %2278 = vmatpush3.bf16.msra.mxu1 %v2511_v16 }
 0x456   : > { %2279 = vmatprep.subr.bf16.mxu1 %v2817_v8 }
 0x457   : > { %2262 = vmatpush3.bf16.msra.mxu0 %v1617_v20 }
 0x458   : > { %2263 = vmatprep.subr.bf16.mxu0 %v2817_v8 }
 0x459   : > { %2280 = vmatpush3.bf16.msra.mxu1 %v2512_v18 }
 0x45a   : > { %2281 = vmatprep.subr.bf16.mxu1 %v2817_v8 }
 0x45b   : > { %2264 = vmatpush3.bf16.msra.mxu0 %v1618_v23 }
 0x45c   : > { %2289 = vmatprep.subr.bf16.mxu0 %v2817_v8 }
 0x45d   : > { %2282 = vmatpush3.bf16.msra.mxu1 %v2513_v22 }
 0x45e   : > { %2283 = vmatprep.subr.bf16.mxu1 %v2817_v8  ;;  %2266 = vmatmul.mubr.bf16.vlgmr.msra.gmra.mrb[0].mxu0 %v1610_v27 }
 0x45f   : > { %2305 = vmatprep.mubr.msk.bf16.mxu0 %vm2818_vm0, %v2817_v8  ;;  %2290 = vmatpush3.bf16.msra.mxu0 %v2515_v25 }
 0x460   : > { %2291 = vmatprep.subr.bf16.mxu0 %v2817_v8 }
 0x461   : > { %2284 = vmatpush3.bf16.msra.mxu1 %v2514_v29 }
 0x463   : > { %2292 = vmatpush3.bf16.msra.mxu0 %v2516_v30 }
 0x464   : > { %2293 = vmatprep.subr.bf16.mxu0 %v2817_v8 }
 0x467   : > { %2294 = vmatpush3.bf16.msra.mxu0 %v2517_v32 }
 0x468   : > { %2295 = vmatprep.subr.bf16.mxu0 %v2817_v8 }
 0x46b   : > { %2296 = vmatpush3.bf16.msra.mxu0 %v2518_v34 }
 0x46c   : > { %2297 = vmatprep.subr.bf16.mxu0 %v2817_v8 }
 0x46f   : > { %2298 = vmatpush3.bf16.msra.mxu0 %v2519_v19 }
 0x470   : > { %2299 = vmatprep.subr.bf16.mxu0 %v2817_v8 }
 0x473   : > { %2300 = vmatpush3.bf16.msra.mxu0 %v2520_v44 }
 0x474   : > { %2301 = vmatprep.subr.bf16.mxu0 %v2817_v8 }
 0x477   : > { %2302 = vmatpush3.bf16.msra.mxu0 %v2521_v38 }
 0x478   : > { %2303 = vmatprep.subr.bf16.mxu0 %v2817_v8 }
 0x47b   : > { %2304 = vmatpush3.bf16.msra.mxu0 %v2522_v46 }
 0x531   : > { %v1653_v24 = vpop.f32.mrb[0].mxu0 }
 0x532   : > { %v1659_v35 = vpack.c.bf16 %v1653_v24, %v1653_v24  ;;  %v2267_v39 = vpop.f32.mrb[1].mxu0 }
 0x533   : > { %v1656_v37 = vpop.f32.mrb[2].mxu0 }
 0x534   : > { %v2268_v28 = vpop.f32.mrb[3].mxu0  ;;  %2286 = vmatmul.mubr.bf16.vlgmr.msra.gmra.mrb[0].mxu1 %v1659_v35 }
 0x607   : > { %v1758_v21 = vpop.f32.mrb[0].mxu1 }
 0x608   : > { %v1771_v41 = vmul.f32 %v2110_v40, %v1758_v21  ;;  %v2287_v43 = vpop.f32.mrb[1].mxu1 }
 0x609   : > { %v1761_v45 = vpop.f32.mrb[2].mxu1 }
 0x60a   : > { %v1779_v47 = vadd.f32 %v2111_v42, %v1771_v41  ;;  %v2288_v48 = vpop.f32.mrb[3].mxu1 }
 0x60c   : > { %v1780_v50 = vmax.f32 %v1779_v47, 0.0 }
 0x60e   : > { %v1781_v52 = vpack.c.bf16 %v1780_v50, %v1780_v50 }
 0x610   : > { %2306 = vmatmul.mubr.bf16.vlgmr.msra.gmra.mrb[4].mxu0 %v1781_v52 }
 0x6e3   : > { %v1887_v55 = vpop.f32.mrb[4].mxu0 }
 0x6e4   : > { %v1888_v57 = vadd.f32 %v2112_v53, %v1887_v55  ;;  %v2307_v58 = vpop.f32.mrb[5].mxu0 }
 0x6e5   : > { %v1890_v59 = vpop.f32.mrb[6].mxu0 }
 0x6e6   : > { %1893 = vst [vmem:[#allocation17] sm:$0xff] %v1888_v57  ;;  %v2308_v60 = vpop.f32.mrb[7].mxu0 }
 0x6e7 PF: > { %p2402_p10 = scmp.eq.s32.totalorder %s2911_s22, 1  ;;  %s2819_s30 = smov [#allocation17]  }
 0x6e8   : > { %s1901_s29 = sshll.u32 %s2819_s30, 4  ;;  %s1902_s29 = int_to_ptr.vmem [resolvable:$true] %s1901_s29 }
 0x6e9   : > { %s2747_s13 = scalar_lea.vmem %s1902_s29, 128  ;;  %p2754_p11 = scmp.lt.s32.totalorder %s1902_s29, %s1902_s29 }
 0x6ea   : > { %p2748_p3 = scmp.ne.s32.totalorder %s1902_s29, %s2747_s13  ;;  %p2755_p12 = scmp.lt.s32.totalorder %s2747_s13, %s2747_s13 }
 0x6ec   : > { %p2749_p8 = pnand %p2748_p3, %p2402_p10  ;;  %p2756_p13 = por %p2755_p12, %p2754_p11 }
 0x6ee   : > { %p2750_p4 = pneg %p2749_p8 }
 0x6f0   : > { %p2757_p6 = pnand %p2756_p13, %p2750_p4 }
 0x6f2   : > { %2760 = shalt.err (!%p2757_p6)
}
 0x6f3   : > { %s3420_s25 = sld [smem:[#allocation30_spill]] }
 0x6f9   : > { %s2761_s27 = scalar_lea.hbm %s3420_s25, 128 }
 0x6fa   : > { %p2762_p0 = scmp.ne.s32.totalorder %s3420_s25, %s2761_s27  ;;  %p2767_p7 = scmp.lt.u32.totalorder %s2761_s27, %s3420_s25 }
 0x6fc   : > { %p2763_p1 = pnand %p2762_p0, %p2402_p10 }
 0x6fe   : > { %p2764_p5 = pneg %p2763_p1 }
 0x700   : > { %p2769_p9 = pnand %p2767_p7, %p2764_p5 }
 0x702   : > { %2772 = shalt.err (!%p2769_p9)
}
 0x703   : > { %2358 = dma.vmem_to_hbm [thread:$0]  (%p2402_p10), %s1902_s29, 128, %s3420_s25, [#allocation5]  }
 0x704   : > { %2798 = dma.done.wait (%p2402_p10), [#allocation5], 128  }
 0x705   : > { %2800 = vsyncadd (%p2402_p10), [#allocation5], 4294967168 }
 0x706 PF: > { %s3421_s0 = sld [smem:[#allocation24_spill]] }
 0x70c   : > { %s32_s21 = sadd.s32 1, %s3421_s0  }
 0x70d   : > { %p29_p2 = scmp.ge.s32.totalorder %s32_s21, 4  }
 0x70f   :  { %31 = sbr.rel (!%p29_p2) target bundleno = 13 (0xd), region = 152 }
 0x716   :  { %1914 = vsyncpa [#allocation4], 1 }
 0x717   :  { %1916 = vsyncpa [#allocation4 + $0x1], 1 }
 0x718   :  { %1917 = vsyncpa [#allocation7], 1 }
 0x719   :  { %1918 = vsyncpa [#allocation10], 1 }
 0x71a   :  { %1919 = vsyncpa [#allocation13], 1 }
 0x71b   :  { %1920 = vsyncpa [#allocation16], 1 }
 0x71c   :  { %1921 = vsyncpa [#allocation5], 1 }
 0x71d   :  { %1923 = vsyncpa [#allocation5 + $0x1], 1 }

</bundles_post_ra>
